<compile_context>
chip_gen: v5e
topology: v5e:2x2
jax: 0.10.0
libtpu: 0.0.40
codegen_flags: <defaults>
</compile_context>

<pallas_src>
import functools

import jax
import jax.numpy as jnp
from jax.experimental import pallas as pl
from jax.experimental.pallas import tpu as pltpu


def _expand_ln_rearrange_kernel(x_ref, w_ref, ws_ref, grp_ref, bcg_ref, b4_ref,
                                o_ref, *, dim, W, th, eps):
    """One grid step handles `th` rows of h (= th*W input tokens).

    x_ref  : (th*W, dim)       input tokens (I/O dtype: f32 or bf16)
    w_ref  : (dim, 16*dim)     expand weight; columns laid out as (p1, p2, c)
    ws_ref : (dim, 16)         per-(p1,p2) column sums of the weight (for means)
    grp_ref: (4*dim, 4)        one-hot lane-group reducer (lane -> p2 group)
    bcg_ref: (4, 4*dim)        one-hot group->lane expander, pre-scaled by gamma
    b4_ref : (1, 4*dim)        LayerNorm beta tiled 4x, f32
    o_ref  : (th, 4, W, 4*dim) output block; row-major order == b,(h p1),(w p2),c
    """
    fourd = 4 * dim
    inv_dim = jnp.float32(1.0 / dim)

    x = x_ref[...]                         # (M, dim), M = th*W
    grp = grp_ref[...]                     # (4*dim, 4)   stats dtype
    bcg = bcg_ref[...]                     # (4, 4*dim)   stats dtype
    beta4 = b4_ref[...]                    # (1, 4*dim)   f32
    sdt = grp.dtype

    # Means of all 16 (p1,p2) channel groups from a single tiny matmul:
    #   sum_c y[:, p1, p2, c] == x @ (sum_c W[:, p1, p2, c])  (precomputed ws).
    mean16 = jnp.dot(x, ws_ref[...], preferred_element_type=jnp.float32) * inv_dim

    for p1 in range(4):                    # static unroll: one output row-offset per pass
        # Linear expand for this p1 on the MXU (f32 accumulate), lane-dense (4*dim).
        w_p1 = w_ref[:, pl.ds(p1 * fourd, fourd)]                    # (dim, 4*dim)
        y = jnp.dot(x, w_p1, preferred_element_type=jnp.float32)     # (M, 4*dim) f32

        # Per-p2-group LayerNorm stats; lane-group reduce via one-hot MXU matmul.
        mean = mean16[:, p1 * 4:(p1 + 1) * 4]                        # (M, 4)
        msq = jnp.dot((y * y).astype(sdt), grp,
                      preferred_element_type=jnp.float32) * inv_dim  # (M, 4)
        var = jnp.maximum(msq - mean * mean, 0.0)
        rstd = jax.lax.rsqrt(var + eps)                              # (M, 4), EUP

        # Broadcast group stats back to lane width; gamma folded into the expander.
        scale = jnp.dot(rstd.astype(sdt), bcg,
                        preferred_element_type=jnp.float32)          # rstd*gamma  (M,4*dim)
        shift = jnp.dot((mean * rstd).astype(sdt), bcg,
                        preferred_element_type=jnp.float32)          # mean*rstd*gamma

        yn = y * scale - shift + beta4
        # Store to output rows (h*4 + p1): static p1 offset on axis 1.
        o_ref[:, p1, :, :] = yn.astype(o_ref.dtype).reshape(th, W, fourd)


def _choose_th(bh, w, dim, itemsize, max_block_bytes, max_tokens):
    """Largest divisor `th` of B*H whose 16x-expanded output block fits the
    budget, keeping the input block's sublane dim (th*W) a multiple of 8 and
    preferring grid length >= 2 (megacore)."""
    divisors = [t for t in range(1, bh + 1) if bh % t == 0]
    # Legal: (t*w) % 8 == 0, or the block covers the whole array (t == bh).
    legal = [t for t in divisors if (t * w) % 8 == 0 or t == bh]
    fit = [t for t in legal
           if t * w * 16 * dim * itemsize <= max_block_bytes and t * w <= max_tokens]
    if fit:
        pref = [t for t in fit if bh // t >= 2]
        return max(pref) if pref else max(fit)
    return min(legal)   # nothing fits the budget -> smallest legal tile


def final_patch_expand_x4(x, w_expand, gamma, beta, *, input_resolution, dim,
                          eps=1e-5, max_block_bytes=4 * 1024 * 1024,
                          max_tokens=2048, vmem_limit_bytes=None):
    """JAX/Pallas equivalent of FinalPatchExpand_X4.forward.

    x        : (B, H*W, dim)  f32 or bf16
    w_expand : (dim, 16*dim)  (== torch Linear(dim, 16*dim).weight.T), same dtype as x
    gamma    : (dim,)         LayerNorm weight
    beta     : (dim,)         LayerNorm bias
    returns  : (B, 16*H*W, dim) in x.dtype
    """
    H, W = input_resolution
    B, L, C = x.shape
    assert L == H * W, "input feature has wrong size"
    assert C == dim
    assert w_expand.shape == (dim, 16 * dim)

    BH = B * H
    fourd = 4 * dim
    itemsize = jnp.dtype(x.dtype).itemsize
    th = _choose_th(BH, W, dim, itemsize, max_block_bytes, max_tokens)
    grid = (BH // th,)

    x2 = x.reshape(BH * W, dim)

    # Tiny host-side precomputations (done once per call, outside the kernel).
    stat_dtype = x.dtype                                  # f32 path: exact; bf16: cheap MXU
    w_f32 = w_expand.astype(jnp.float32)
    ws = w_f32.reshape(dim, 16, dim).sum(axis=-1).astype(x.dtype)          # (dim, 16)
    group = jnp.arange(fourd) // dim                                       # lane -> p2
    onehot = (group[:, None] == jnp.arange(4)[None, :]).astype(jnp.float32)  # (4*dim, 4)
    gamma4 = jnp.tile(gamma.astype(jnp.float32), 4)                        # (4*dim,)
    grp = onehot.astype(stat_dtype)                                        # (4*dim, 4)
    bcg = (onehot.T * gamma4[None, :]).astype(stat_dtype)                  # (4, 4*dim)
    beta4 = jnp.tile(beta.astype(jnp.float32), 4).reshape(1, fourd)        # (1, 4*dim)

    kernel = functools.partial(_expand_ln_rearrange_kernel,
                               dim=dim, W=W, th=th, eps=eps)

    cp_kwargs = dict(dimension_semantics=("parallel",))
    if vmem_limit_bytes is not None:
        cp_kwargs["vmem_limit_bytes"] = int(vmem_limit_bytes)

    y4 = pl.pallas_call(
        kernel,
        out_shape=jax.ShapeDtypeStruct((BH, 4, W, fourd), x.dtype),
        grid_spec=pltpu.PrefetchScalarGridSpec(
            num_scalar_prefetch=0,
            grid=grid,
            in_specs=[
                pl.BlockSpec((th * W, dim), lambda i: (i, 0)),
                pl.BlockSpec((dim, 16 * dim), lambda i: (0, 0)),
                pl.BlockSpec((dim, 16), lambda i: (0, 0)),
                pl.BlockSpec((fourd, 4), lambda i: (0, 0)),
                pl.BlockSpec((4, fourd), lambda i: (0, 0)),
                pl.BlockSpec((1, fourd), lambda i: (0, 0)),
            ],
            out_specs=pl.BlockSpec((th, 4, W, fourd), lambda i: (i, 0, 0, 0)),
        ),
        compiler_params=pltpu.CompilerParams(**cp_kwargs),
    )(x2, w_expand, ws, grp, bcg, beta4)

    # (BH, 4, W, 4*dim) is already laid out as b,(h p1),(w p2),c -> free reshape.
    return y4.reshape(B, 16 * H * W, dim)


def _reference(x, w_expand, gamma, beta, *, input_resolution, dim, eps=1e-5):
    """Pure-JAX reference mirroring the PyTorch forward."""
    H, W = input_resolution
    B, L, _ = x.shape
    y = jnp.einsum("blc,cd->bld", x.astype(jnp.float32), w_expand.astype(jnp.float32),
                   precision=jax.lax.Precision.HIGHEST)
    p = 4
    y = y.reshape(B, H, W, p, p, dim)
    y = jnp.transpose(y, (0, 1, 3, 2, 4, 5)).reshape(B, H * p * W * p, dim)
    mean = jnp.mean(y, axis=-1, keepdims=True)
    var = jnp.mean(jnp.square(y - mean), axis=-1, keepdims=True)
    yn = (y - mean) * jax.lax.rsqrt(var + eps)
    return yn * gamma + beta


if __name__ == "__main__":
    B = 2
    H = W = 8
    dim = 32
    input_resolution = (H, W)

    key = jax.random.PRNGKey(0)
    kx, kw, kg, kb = jax.random.split(key, 4)

    x = jax.random.normal(kx, (B, H * W, dim), dtype=jnp.float32)
    # torch Linear(dim, 16*dim, bias=False).weight has shape (16*dim, dim);
    # we store its transpose so the kernel computes x @ W directly.
    w_expand = (jax.random.normal(kw, (dim, 16 * dim), dtype=jnp.float32)
                * (1.0 / jnp.sqrt(dim)))
    gamma = 1.0 + 0.1 * jax.random.normal(kg, (dim,), dtype=jnp.float32)
    beta = 0.1 * jax.random.normal(kb, (dim,), dtype=jnp.float32)

    ref = _reference(x, w_expand, gamma, beta,
                     input_resolution=input_resolution, dim=dim)

    # f32 path.
    out = final_patch_expand_x4(x, w_expand, gamma, beta,
                                input_resolution=input_resolution, dim=dim)
    out = jax.block_until_ready(out)
    assert out.shape == (B, 16 * H * W, dim)
    assert jnp.allclose(out, ref, atol=2e-3, rtol=2e-3), "f32 mismatch vs reference"

    # bf16 I/O path (memory-bound op -> halves HBM bytes); loose tolerance.
    out_bf16 = final_patch_expand_x4(
        x.astype(jnp.bfloat16), w_expand.astype(jnp.bfloat16), gamma, beta,
        input_resolution=input_resolution, dim=dim)
    out_bf16 = jax.block_until_ready(out_bf16)
    assert out_bf16.dtype == jnp.bfloat16
    assert jnp.allclose(out_bf16.astype(jnp.float32), ref, atol=1e-1, rtol=1e-1), \
        "bf16 mismatch vs reference"

    print("KERNEL_OK")
</pallas_src>

<mosaic_0001>
module attributes {stable_mosaic.version = 11 : i64} {
  func.func @_expand_ln_rearrange_kernel(%arg0: i32, %arg1: memref<64x32xf32, #tpu.memory_space<vmem>>, %arg2: memref<32x512xf32, #tpu.memory_space<vmem>>, %arg3: memref<32x16xf32, #tpu.memory_space<vmem>>, %arg4: memref<128x4xf32, #tpu.memory_space<vmem>>, %arg5: memref<4x128xf32, #tpu.memory_space<vmem>>, %arg6: memref<1x128xf32, #tpu.memory_space<vmem>>, %arg7: memref<8x4x8x128xf32, #tpu.memory_space<vmem>>) attributes {dimension_semantics = [#tpu.dimension_semantics<parallel>], iteration_bounds = array<i64: 2>, scalar_prefetch = 0 : i64, scratch_operands = 0 : i64, tpu.core_type = #tpu.core_type<tc>, window_params = [{transform_indices = @transform_0, window_bounds = array<i64: 64, 32>}, {pipeline_mode = #tpu.pipeline_mode<synchronous>, transform_indices = @transform_1, window_bounds = array<i64: 32, 512>}, {pipeline_mode = #tpu.pipeline_mode<synchronous>, transform_indices = @transform_2, window_bounds = array<i64: 32, 16>}, {pipeline_mode = #tpu.pipeline_mode<synchronous>, transform_indices = @transform_3, window_bounds = array<i64: 128, 4>}, {pipeline_mode = #tpu.pipeline_mode<synchronous>, transform_indices = @transform_4, window_bounds = array<i64: 4, 128>}, {pipeline_mode = #tpu.pipeline_mode<synchronous>, transform_indices = @transform_5, window_bounds = array<i64: 1, 128>}, {transform_indices = @transform_6, window_bounds = array<i64: 8, 4, 8, 128>}]} {
    %c0 = arith.constant 0 : index
    %c0_0 = arith.constant 0 : index
    %0 = vector.load %arg1[%c0, %c0_0] : memref<64x32xf32, #tpu.memory_space<vmem>>, vector<64x32xf32>
    %c0_1 = arith.constant 0 : index
    %c0_2 = arith.constant 0 : index
    %1 = vector.load %arg4[%c0_1, %c0_2] : memref<128x4xf32, #tpu.memory_space<vmem>>, vector<128x4xf32>
    %c0_3 = arith.constant 0 : index
    %c0_4 = arith.constant 0 : index
    %2 = vector.load %arg5[%c0_3, %c0_4] : memref<4x128xf32, #tpu.memory_space<vmem>>, vector<4x128xf32>
    %c0_5 = arith.constant 0 : index
    %c0_6 = arith.constant 0 : index
    %3 = vector.load %arg6[%c0_5, %c0_6] : memref<1x128xf32, #tpu.memory_space<vmem>>, vector<1x128xf32>
    %c0_7 = arith.constant 0 : index
    %c0_8 = arith.constant 0 : index
    %4 = vector.load %arg3[%c0_7, %c0_8] : memref<32x16xf32, #tpu.memory_space<vmem>>, vector<32x16xf32>
    %cst = arith.constant dense<0.000000e+00> : vector<64x16xf32>
    %5 = tpu.matmul %0, %4, %cst {dimension_numbers = #tpu.dot_dimension_numbers<[1], [0], [0], [1], [0, 0, 1, 1], [], []>} : vector<64x32xf32>, vector<32x16xf32>, vector<64x16xf32> -> vector<64x16xf32>
    %cst_9 = arith.constant 3.125000e-02 : f32
    %6 = vector.broadcast %cst_9 : f32 to vector<64x16xf32>
    %7 = arith.mulf %5, %6 : vector<64x16xf32>
    %c0_10 = arith.constant 0 : index
    %c0_11 = arith.constant 0 : index
    %8 = vector.load %arg2[%c0_10, %c0_11] : memref<32x512xf32, #tpu.memory_space<vmem>>, vector<32x128xf32>
    %cst_12 = arith.constant dense<0.000000e+00> : vector<64x128xf32>
    %9 = tpu.matmul %0, %8, %cst_12 {dimension_numbers = #tpu.dot_dimension_numbers<[1], [0], [0], [1], [0, 0, 1, 1], [], []>} : vector<64x32xf32>, vector<32x128xf32>, vector<64x128xf32> -> vector<64x128xf32>
    %10 = vector.extract_strided_slice %7 {offsets = [0, 0], sizes = [64, 4], strides = [1, 1]} : vector<64x16xf32> to vector<64x4xf32>
    %11 = arith.mulf %9, %9 : vector<64x128xf32>
    %cst_13 = arith.constant dense<0.000000e+00> : vector<64x4xf32>
    %12 = tpu.matmul %11, %1, %cst_13 {dimension_numbers = #tpu.dot_dimension_numbers<[1], [0], [0], [1], [0, 0, 1, 1], [], []>} : vector<64x128xf32>, vector<128x4xf32>, vector<64x4xf32> -> vector<64x4xf32>
    %cst_14 = arith.constant 3.125000e-02 : f32
    %13 = vector.broadcast %cst_14 : f32 to vector<64x4xf32>
    %14 = arith.mulf %12, %13 : vector<64x4xf32>
    %15 = arith.mulf %10, %10 : vector<64x4xf32>
    %16 = arith.subf %14, %15 : vector<64x4xf32>
    %cst_15 = arith.constant 0.000000e+00 : f32
    %17 = vector.broadcast %cst_15 : f32 to vector<64x4xf32>
    %18 = arith.maximumf %16, %17 : vector<64x4xf32>
    %cst_16 = arith.constant 9.99999974E-6 : f32
    %19 = vector.broadcast %cst_16 : f32 to vector<64x4xf32>
    %20 = arith.addf %18, %19 : vector<64x4xf32>
    %21 = math.rsqrt %20 : vector<64x4xf32>
    %cst_17 = arith.constant dense<0.000000e+00> : vector<64x128xf32>
    %22 = tpu.matmul %21, %2, %cst_17 {dimension_numbers = #tpu.dot_dimension_numbers<[1], [0], [0], [1], [0, 0, 1, 1], [], []>} : vector<64x4xf32>, vector<4x128xf32>, vector<64x128xf32> -> vector<64x128xf32>
    %23 = arith.mulf %10, %21 : vector<64x4xf32>
    %cst_18 = arith.constant dense<0.000000e+00> : vector<64x128xf32>
    %24 = tpu.matmul %23, %2, %cst_18 {dimension_numbers = #tpu.dot_dimension_numbers<[1], [0], [0], [1], [0, 0, 1, 1], [], []>} : vector<64x4xf32>, vector<4x128xf32>, vector<64x128xf32> -> vector<64x128xf32>
    %25 = arith.mulf %9, %22 : vector<64x128xf32>
    %26 = arith.subf %25, %24 : vector<64x128xf32>
    %27 = vector.broadcast %3 : vector<1x128xf32> to vector<64x128xf32>
    %28 = arith.addf %26, %27 : vector<64x128xf32>
    %29 = vector.shape_cast %28 : vector<64x128xf32> to vector<8x8x128xf32>
    %c0_19 = arith.constant 0 : index
    %c0_20 = arith.constant 0 : index
    %c0_21 = arith.constant 0 : index
    %c0_22 = arith.constant 0 : index
    %30 = vector.load %arg7[%c0_19, %c0_20, %c0_21, %c0_22] : memref<8x4x8x128xf32, #tpu.memory_space<vmem>>, vector<8x1x8x128xf32>
    %31 = vector.shape_cast %30 : vector<8x1x8x128xf32> to vector<8x8x128xf32>
    %32 = vector.shape_cast %29 : vector<8x8x128xf32> to vector<8x1x8x128xf32>
    tpu.vector_store %arg7[%c0_19, %c0_20, %c0_21, %c0_22], %32 {strides = array<i32>} : memref<8x4x8x128xf32, #tpu.memory_space<vmem>>, vector<8x1x8x128xf32>,
    %c0_23 = arith.constant 0 : index
    %c128 = arith.constant 128 : index
    %33 = vector.load %arg2[%c0_23, %c128] : memref<32x512xf32, #tpu.memory_space<vmem>>, vector<32x128xf32>
    %cst_24 = arith.constant dense<0.000000e+00> : vector<64x128xf32>
    %34 = tpu.matmul %0, %33, %cst_24 {dimension_numbers = #tpu.dot_dimension_numbers<[1], [0], [0], [1], [0, 0, 1, 1], [], []>} : vector<64x32xf32>, vector<32x128xf32>, vector<64x128xf32> -> vector<64x128xf32>
    %35 = vector.extract_strided_slice %7 {offsets = [0, 4], sizes = [64, 4], strides = [1, 1]} : vector<64x16xf32> to vector<64x4xf32>
    %36 = arith.mulf %34, %34 : vector<64x128xf32>
    %cst_25 = arith.constant dense<0.000000e+00> : vector<64x4xf32>
    %37 = tpu.matmul %36, %1, %cst_25 {dimension_numbers = #tpu.dot_dimension_numbers<[1], [0], [0], [1], [0, 0, 1, 1], [], []>} : vector<64x128xf32>, vector<128x4xf32>, vector<64x4xf32> -> vector<64x4xf32>
    %cst_26 = arith.constant 3.125000e-02 : f32
    %38 = vector.broadcast %cst_26 : f32 to vector<64x4xf32>
    %39 = arith.mulf %37, %38 : vector<64x4xf32>
    %40 = arith.mulf %35, %35 : vector<64x4xf32>
    %41 = arith.subf %39, %40 : vector<64x4xf32>
    %cst_27 = arith.constant 0.000000e+00 : f32
    %42 = vector.broadcast %cst_27 : f32 to vector<64x4xf32>
    %43 = arith.maximumf %41, %42 : vector<64x4xf32>
    %cst_28 = arith.constant 9.99999974E-6 : f32
    %44 = vector.broadcast %cst_28 : f32 to vector<64x4xf32>
    %45 = arith.addf %43, %44 : vector<64x4xf32>
    %46 = math.rsqrt %45 : vector<64x4xf32>
    %cst_29 = arith.constant dense<0.000000e+00> : vector<64x128xf32>
    %47 = tpu.matmul %46, %2, %cst_29 {dimension_numbers = #tpu.dot_dimension_numbers<[1], [0], [0], [1], [0, 0, 1, 1], [], []>} : vector<64x4xf32>, vector<4x128xf32>, vector<64x128xf32> -> vector<64x128xf32>
    %48 = arith.mulf %35, %46 : vector<64x4xf32>
    %cst_30 = arith.constant dense<0.000000e+00> : vector<64x128xf32>
    %49 = tpu.matmul %48, %2, %cst_30 {dimension_numbers = #tpu.dot_dimension_numbers<[1], [0], [0], [1], [0, 0, 1, 1], [], []>} : vector<64x4xf32>, vector<4x128xf32>, vector<64x128xf32> -> vector<64x128xf32>
    %50 = arith.mulf %34, %47 : vector<64x128xf32>
    %51 = arith.subf %50, %49 : vector<64x128xf32>
    %52 = vector.broadcast %3 : vector<1x128xf32> to vector<64x128xf32>
    %53 = arith.addf %51, %52 : vector<64x128xf32>
    %54 = vector.shape_cast %53 : vector<64x128xf32> to vector<8x8x128xf32>
    %c0_31 = arith.constant 0 : index
    %c1 = arith.constant 1 : index
    %c0_32 = arith.constant 0 : index
    %c0_33 = arith.constant 0 : index
    %55 = vector.load %arg7[%c0_31, %c1, %c0_32, %c0_33] : memref<8x4x8x128xf32, #tpu.memory_space<vmem>>, vector<8x1x8x128xf32>
    %56 = vector.shape_cast %55 : vector<8x1x8x128xf32> to vector<8x8x128xf32>
    %57 = vector.shape_cast %54 : vector<8x8x128xf32> to vector<8x1x8x128xf32>
    tpu.vector_store %arg7[%c0_31, %c1, %c0_32, %c0_33], %57 {strides = array<i32>} : memref<8x4x8x128xf32, #tpu.memory_space<vmem>>, vector<8x1x8x128xf32>,
    %c0_34 = arith.constant 0 : index
    %c256 = arith.constant 256 : index
    %58 = vector.load %arg2[%c0_34, %c256] : memref<32x512xf32, #tpu.memory_space<vmem>>, vector<32x128xf32>
    %cst_35 = arith.constant dense<0.000000e+00> : vector<64x128xf32>
    %59 = tpu.matmul %0, %58, %cst_35 {dimension_numbers = #tpu.dot_dimension_numbers<[1], [0], [0], [1], [0, 0, 1, 1], [], []>} : vector<64x32xf32>, vector<32x128xf32>, vector<64x128xf32> -> vector<64x128xf32>
    %60 = vector.extract_strided_slice %7 {offsets = [0, 8], sizes = [64, 4], strides = [1, 1]} : vector<64x16xf32> to vector<64x4xf32>
    %61 = arith.mulf %59, %59 : vector<64x128xf32>
    %cst_36 = arith.constant dense<0.000000e+00> : vector<64x4xf32>
    %62 = tpu.matmul %61, %1, %cst_36 {dimension_numbers = #tpu.dot_dimension_numbers<[1], [0], [0], [1], [0, 0, 1, 1], [], []>} : vector<64x128xf32>, vector<128x4xf32>, vector<64x4xf32> -> vector<64x4xf32>
    %cst_37 = arith.constant 3.125000e-02 : f32
    %63 = vector.broadcast %cst_37 : f32 to vector<64x4xf32>
    %64 = arith.mulf %62, %63 : vector<64x4xf32>
    %65 = arith.mulf %60, %60 : vector<64x4xf32>
    %66 = arith.subf %64, %65 : vector<64x4xf32>
    %cst_38 = arith.constant 0.000000e+00 : f32
    %67 = vector.broadcast %cst_38 : f32 to vector<64x4xf32>
    %68 = arith.maximumf %66, %67 : vector<64x4xf32>
    %cst_39 = arith.constant 9.99999974E-6 : f32
    %69 = vector.broadcast %cst_39 : f32 to vector<64x4xf32>
    %70 = arith.addf %68, %69 : vector<64x4xf32>
    %71 = math.rsqrt %70 : vector<64x4xf32>
    %cst_40 = arith.constant dense<0.000000e+00> : vector<64x128xf32>
    %72 = tpu.matmul %71, %2, %cst_40 {dimension_numbers = #tpu.dot_dimension_numbers<[1], [0], [0], [1], [0, 0, 1, 1], [], []>} : vector<64x4xf32>, vector<4x128xf32>, vector<64x128xf32> -> vector<64x128xf32>
    %73 = arith.mulf %60, %71 : vector<64x4xf32>
    %cst_41 = arith.constant dense<0.000000e+00> : vector<64x128xf32>
    %74 = tpu.matmul %73, %2, %cst_41 {dimension_numbers = #tpu.dot_dimension_numbers<[1], [0], [0], [1], [0, 0, 1, 1], [], []>} : vector<64x4xf32>, vector<4x128xf32>, vector<64x128xf32> -> vector<64x128xf32>
    %75 = arith.mulf %59, %72 : vector<64x128xf32>
    %76 = arith.subf %75, %74 : vector<64x128xf32>
    %77 = vector.broadcast %3 : vector<1x128xf32> to vector<64x128xf32>
    %78 = arith.addf %76, %77 : vector<64x128xf32>
    %79 = vector.shape_cast %78 : vector<64x128xf32> to vector<8x8x128xf32>
    %c0_42 = arith.constant 0 : index
    %c2 = arith.constant 2 : index
    %c0_43 = arith.constant 0 : index
    %c0_44 = arith.constant 0 : index
    %80 = vector.load %arg7[%c0_42, %c2, %c0_43, %c0_44] : memref<8x4x8x128xf32, #tpu.memory_space<vmem>>, vector<8x1x8x128xf32>
    %81 = vector.shape_cast %80 : vector<8x1x8x128xf32> to vector<8x8x128xf32>
    %82 = vector.shape_cast %79 : vector<8x8x128xf32> to vector<8x1x8x128xf32>
    tpu.vector_store %arg7[%c0_42, %c2, %c0_43, %c0_44], %82 {strides = array<i32>} : memref<8x4x8x128xf32, #tpu.memory_space<vmem>>, vector<8x1x8x128xf32>,
    %c0_45 = arith.constant 0 : index
    %c384 = arith.constant 384 : index
    %83 = vector.load %arg2[%c0_45, %c384] : memref<32x512xf32, #tpu.memory_space<vmem>>, vector<32x128xf32>
    %cst_46 = arith.constant dense<0.000000e+00> : vector<64x128xf32>
    %84 = tpu.matmul %0, %83, %cst_46 {dimension_numbers = #tpu.dot_dimension_numbers<[1], [0], [0], [1], [0, 0, 1, 1], [], []>} : vector<64x32xf32>, vector<32x128xf32>, vector<64x128xf32> -> vector<64x128xf32>
    %85 = vector.extract_strided_slice %7 {offsets = [0, 12], sizes = [64, 4], strides = [1, 1]} : vector<64x16xf32> to vector<64x4xf32>
    %86 = arith.mulf %84, %84 : vector<64x128xf32>
    %cst_47 = arith.constant dense<0.000000e+00> : vector<64x4xf32>
    %87 = tpu.matmul %86, %1, %cst_47 {dimension_numbers = #tpu.dot_dimension_numbers<[1], [0], [0], [1], [0, 0, 1, 1], [], []>} : vector<64x128xf32>, vector<128x4xf32>, vector<64x4xf32> -> vector<64x4xf32>
    %cst_48 = arith.constant 3.125000e-02 : f32
    %88 = vector.broadcast %cst_48 : f32 to vector<64x4xf32>
    %89 = arith.mulf %87, %88 : vector<64x4xf32>
    %90 = arith.mulf %85, %85 : vector<64x4xf32>
    %91 = arith.subf %89, %90 : vector<64x4xf32>
    %cst_49 = arith.constant 0.000000e+00 : f32
    %92 = vector.broadcast %cst_49 : f32 to vector<64x4xf32>
    %93 = arith.maximumf %91, %92 : vector<64x4xf32>
    %cst_50 = arith.constant 9.99999974E-6 : f32
    %94 = vector.broadcast %cst_50 : f32 to vector<64x4xf32>
    %95 = arith.addf %93, %94 : vector<64x4xf32>
    %96 = math.rsqrt %95 : vector<64x4xf32>
    %cst_51 = arith.constant dense<0.000000e+00> : vector<64x128xf32>
    %97 = tpu.matmul %96, %2, %cst_51 {dimension_numbers = #tpu.dot_dimension_numbers<[1], [0], [0], [1], [0, 0, 1, 1], [], []>} : vector<64x4xf32>, vector<4x128xf32>, vector<64x128xf32> -> vector<64x128xf32>
    %98 = arith.mulf %85, %96 : vector<64x4xf32>
    %cst_52 = arith.constant dense<0.000000e+00> : vector<64x128xf32>
    %99 = tpu.matmul %98, %2, %cst_52 {dimension_numbers = #tpu.dot_dimension_numbers<[1], [0], [0], [1], [0, 0, 1, 1], [], []>} : vector<64x4xf32>, vector<4x128xf32>, vector<64x128xf32> -> vector<64x128xf32>
    %100 = arith.mulf %84, %97 : vector<64x128xf32>
    %101 = arith.subf %100, %99 : vector<64x128xf32>
    %102 = vector.broadcast %3 : vector<1x128xf32> to vector<64x128xf32>
    %103 = arith.addf %101, %102 : vector<64x128xf32>
    %104 = vector.shape_cast %103 : vector<64x128xf32> to vector<8x8x128xf32>
    %c0_53 = arith.constant 0 : index
    %c3 = arith.constant 3 : index
    %c0_54 = arith.constant 0 : index
    %c0_55 = arith.constant 0 : index
    %105 = vector.load %arg7[%c0_53, %c3, %c0_54, %c0_55] : memref<8x4x8x128xf32, #tpu.memory_space<vmem>>, vector<8x1x8x128xf32>
    %106 = vector.shape_cast %105 : vector<8x1x8x128xf32> to vector<8x8x128xf32>
    %107 = vector.shape_cast %104 : vector<8x8x128xf32> to vector<8x1x8x128xf32>
    tpu.vector_store %arg7[%c0_53, %c3, %c0_54, %c0_55], %107 {strides = array<i32>} : memref<8x4x8x128xf32, #tpu.memory_space<vmem>>, vector<8x1x8x128xf32>,
    return
  }
  func.func @transform_0(%arg0: i32) -> (i32, i32) {
    %c0_i32 = arith.constant 0 : i32
    %c0_i32_0 = arith.constant 0 : i32
    return %arg0, %c0_i32 : i32, i32
  }
  func.func @transform_1(%arg0: i32) -> (i32, i32) {
    %c0_i32 = arith.constant 0 : i32
    %c0_i32_0 = arith.constant 0 : i32
    %c0_i32_1 = arith.constant 0 : i32
    return %c0_i32, %c0_i32_0 : i32, i32
  }
  func.func @transform_2(%arg0: i32) -> (i32, i32) {
    %c0_i32 = arith.constant 0 : i32
    %c0_i32_0 = arith.constant 0 : i32
    %c0_i32_1 = arith.constant 0 : i32
    return %c0_i32, %c0_i32_0 : i32, i32
  }
  func.func @transform_3(%arg0: i32) -> (i32, i32) {
    %c0_i32 = arith.constant 0 : i32
    %c0_i32_0 = arith.constant 0 : i32
    %c0_i32_1 = arith.constant 0 : i32
    return %c0_i32, %c0_i32_0 : i32, i32
  }
  func.func @transform_4(%arg0: i32) -> (i32, i32) {
    %c0_i32 = arith.constant 0 : i32
    %c0_i32_0 = arith.constant 0 : i32
    %c0_i32_1 = arith.constant 0 : i32
    return %c0_i32, %c0_i32_0 : i32, i32
  }
  func.func @transform_5(%arg0: i32) -> (i32, i32) {
    %c0_i32 = arith.constant 0 : i32
    %c0_i32_0 = arith.constant 0 : i32
    %c0_i32_1 = arith.constant 0 : i32
    return %c0_i32, %c0_i32_0 : i32, i32
  }
  func.func @transform_6(%arg0: i32) -> (i32, i32, i32, i32) {
    %c0_i32 = arith.constant 0 : i32
    %c0_i32_0 = arith.constant 0 : i32
    %c0_i32_1 = arith.constant 0 : i32
    %c0_i32_2 = arith.constant 0 : i32
    return %arg0, %c0_i32, %c0_i32_0, %c0_i32_1 : i32, i32, i32, i32
  }
}

</mosaic_0001>

<bundles_post_ra>
// kernel: tpu_custom_call.1
= control target key start
LH: loop header
LB: loop body
LE: loop exit
PB: predicated region body
PF: predicated region fallthrough
CT: control target
= control target key end

     0   :  { %11 = vsyncpa [#allocation3], 0  ;;  %s3545_s0 = inlined_call_operand.vmem [shape: f32[128,32], index: 0, kind: input, shape index: {}]   ;;  %s3546_s1 = inlined_call_operand.vmem [shape: f32[32,512], index: 1, kind: input, shape index: {}]   ;;  %s3547_s2 = inlined_call_operand.vmem [shape: f32[32,16], index: 2, kind: input, shape index: {}]   ;;  %s3548_s3 = inlined_call_operand.vmem [shape: f32[128,4], index: 3, kind: input, shape index: {}]   ;;  %s3549_s4 = inlined_call_operand.vmem [shape: f32[4,128], index: 4, kind: input, shape index: {}]   ;;  %s3550_s5 = inlined_call_operand.vmem [shape: f32[1,128], index: 5, kind: input, shape index: {}]   ;;  %s3551_s6 = inlined_call_operand.hbm [shape: f32[16,4,8,128], index: 6, kind: output, shape index: {}]  }
   0x1   :  { %13 = vsyncpa [#allocation3 + $0x1], 0  ;;  %s2534_s21 = smov 0   ;;  %s2536_s22 = smov 0  }
   0x2   :  { %s2538_s23 = smov 0   ;;  %s2540_s24 = smov 0  }
   0x3 LB: > { %s2555_s25 = sadd.s32 4294967295, %s2490_s24   ;;  %s2159_s26 = sadd.s32 4294967294, %s2490_s24   ;;  %s2490_s24 = sphi %s2540_s24, %s3579_s24   ;;  %s2486_s23 = sphi %s2538_s23, %s3578_s23   ;;  %s2482_s22 = sphi %s2536_s22, %s3577_s22   ;;  %s2478_s21 = sphi %s2534_s21, %s3576_s21  }
   0x4   : > { %s2559_s27 = sadd.s32 1, %s2490_s24   ;;  %s157_s28 = sadd.s32 1, %s2486_s23 }
   0x5   : > { %s154_s29 = ssub.s32 %s2490_s24, %s2559_s27  ;;  %p167_p0 = scmp.ne.s32.totalorder %s2486_s23, %s2482_s22 }
   0x6   : > { %p155_p1 = scmp.eq.s32.totalorder %s154_s29, 0  ;;  %p168_p2 = scmp.eq.s32.totalorder %s2555_s25, 1 }
   0x7   : > { %p173_p3 = scmp.ne.s32.totalorder %s2482_s22, %s2478_s21  ;;  %p174_p4 = scmp.eq.s32.totalorder %s2159_s26, 1 }
   0x8   : > { %s2570_s30 = scalar_select %p155_p1, %s2486_s23, %s157_s28  }
   0x9   : > { %p2572_p5 = por %p168_p2, %p167_p0  ;;  %p2576_p6 = por %p174_p4, %p173_p3 }
   0xa   : > { %p2162_p7 = scmp.ge.s32.totalorder %s2490_s24, 1  ;;  %p216_p8 = scmp.lt.s32.totalorder %s2490_s24, 3 }
   0xc   : > { %p217_p9 = pnand %p2162_p7, %p216_p8 }
   0xe   : > { %220 = sbr.rel (%p217_p9) target bundleno = 1334 (0x536), region = 44 }
  0x13   : > { %v282_v0 = vld [vmem:[%s3547_s2 + $0x18] sm:$0xff]  ;;  %v281_v1 = vld [vmem:[%s3547_s2 + $0x10] sm:$0xff]  ;;  %s2164_s13 = sshll.u32 %s2555_s25, 3  ;;  %v280_v2 = vld [vmem:[%s3547_s2 + $0x8] sm:$0xff]  ;;  %vm283_vm0 = vcmask 261120   ;;  %vm596_vm1 = vcmask 1043456  }
  0x14   : > { %320 = vmatpush.msra.mxu0 %v282_v0  ;;  %2310 = vmatpush.msra.mxu1 %v282_v0  ;;  %p247_p10 = scmp.lt.s32.totalorder %s2164_s13, 15  ;;  %v279_v3 = vld [vmem:[%s3547_s2] sm:$0xff]  ;;  %v2651_v14 = vld [vmem:[%s3548_s3 + $0x78] sm:$0xff]  ;;  %v2656_v15 = vld [vmem:[%s3548_s3 + $0x70] sm:$0xff]  ;;  %vm571_vm4 = vcmask 31744   ;;  %s243_s19 = sand.u32 1, %s2482_s22  }
  0x15   : > { %v360_v4 = vld [vmem:[%s3546_s1 + $0x60] sm:$0xff]  ;;  %410 = vmatpush.msra.mxu2 %v2651_v14  ;;  %v2665_v16 = vld [vmem:[%s3548_s3 + $0x68] sm:$0xff]  ;;  %v2679_v18 = vld [vmem:[%s3548_s3 + $0x58] sm:$0xff]  ;;  %s2163_s20 = sshll.u32 %s243_s19, 8  ;;  %s2494_s10 = smov 4  }
  0x16   : > { %321 = vmatpush.msra.mxu0 %v281_v1  ;;  %2311 = vmatpush.msra.mxu1 %v281_v1  ;;  %s3581_s13 = smov (!%p247_p10, %s2164_s13), 15  ;;  %v359_v7 = vld [vmem:[%s3546_s1 + $0x40] sm:$0xff]  ;;  %v2691_v20 = vld [vmem:[%s3548_s3 + $0x50] sm:$0xff]  ;;  %v2700_v21 = vld [vmem:[%s3548_s3 + $0x48] sm:$0xff]  ;;  %s3100_s9 = scalar_lea.vmem [#allocation2], %s2163_s20 }
  0x17   : > { %s2165_s18 = sshll.u32 %s3581_s13, 3  ;;  %v358_v8 = vld [vmem:[%s3546_s1 + $0x20] sm:$0xff]  ;;  %411 = vmatpush.msra.mxu2 %v2656_v15  ;;  %v2714_v23 = vld [vmem:[%s3548_s3 + $0x38] sm:$0xff]  ;;  %v2726_v25 = vld [vmem:[%s3548_s3 + $0x30] sm:$0xff]  ;;  %s2495_s11 = smov 116  }
  0x18   : > { %322 = vmatpush.msra.mxu0 %v280_v2  ;;  %2312 = vmatpush.msra.mxu1 %v280_v2  ;;  %s2598_s26 = scalar_lea.vmem %s3545_s0, %s2165_s18  ;;  %v357_v9 = vld [vmem:[%s3546_s1] sm:$0xff]  ;;  %v2741_v26 = vld [vmem:[%s3548_s3 + $0x28] sm:$0xff]  ;;  %v2753_v28 = vld [vmem:[%s3548_s3 + $0x18] sm:$0xff]  ;;  %s2492_s18 = smov 124  }
  0x19   : > { %v2604_v5 = vld [vmem:[%s2598_s26] sm:$0xff]  ;;  %v2607_v6 = vld [vmem:[%s2598_s26 + $0x38] sm:$0xff]  ;;  %v2623_v10 = vld [vmem:[%s2598_s26 + $0x8] sm:$0xff]  ;;  %412 = vmatpush.msra.mxu2 %v2665_v16  ;;  %s2496_s12 = smov 8   ;;  %s2309_s16 = sshll.u32 %s2555_s25, 8 }
  0x1a   : > { %323 = vmatpush.msra.mxu0 %v279_v3  ;;  %2313 = vmatpush.msra.mxu1 %v279_v3  ;;  %v2630_v11 = vld [vmem:[%s2598_s26 + $0x10] sm:$0xff]  ;;  %v2637_v12 = vld [vmem:[%s2598_s26 + $0x18] sm:$0xff]  ;;  %v2644_v13 = vld [vmem:[%s2598_s26 + $0x20] sm:$0xff]  ;;  %s2093_s28 = scalar_lea.hbm %s3551_s6, %s2309_s16  ;;  %s2094_s29 = sshll.u32 %s3100_s9, 4  ;;  %s2095_s29 = int_to_ptr.vmem [resolvable:$true] %s2094_s29 }
  0x1b   : > { %2166 = vmatmul.msk.f32.vlgmr.msra.gmra.mxu0 %vm283_vm0, %v2604_v5  ;;  %2173 = vmatmul.msk.f32.vlgmr.msra.gmra.mxu1 %vm283_vm0, %v2607_v6  ;;  %v2672_v17 = vld [vmem:[%s3548_s3 + $0x60] sm:$0xff]  ;;  %v2682_v19 = vld [vmem:[%s2598_s26 + $0x28] sm:$0xff]  ;;  %v2717_v24 = vld [vmem:[%s2598_s26 + $0x30] sm:$0xff]  ;;  %s2493_s26 = smov 120   ;;  %s2081_s25 = scalar_lea.sflag [#allocation3], %s243_s19 }
  0x1c   : > { %373 = vmatpush.msrb.mxu1 %v360_v4  ;;  %413 = vmatpush.msra.mxu2 %v2672_v17  ;;  %v2707_v22 = vld [vmem:[%s3548_s3 + $0x40] sm:$0xff]  ;;  %v2760_v29 = vld [vmem:[%s3548_s3 + $0x10] sm:$0xff]  ;;  %v2769_v30 = vld [vmem:[%s3548_s3 + $0x8] sm:$0xff] }
  0x1d   : > { %v2748_v27 = vld [vmem:[%s3548_s3 + $0x20] sm:$0xff] }
  0x1e   : > { %374 = vmatpush.msrb.mxu1 %v359_v7  ;;  %414 = vmatpush.msra.mxu2 %v2679_v18  ;;  %v2776_v31 = vld [vmem:[%s3548_s3] sm:$0xff] }
  0x1f   : > { %v2839_v52 = vld [vmem:[%s3549_s4] sm:$0xf] }
  0x20   : > { %375 = vmatpush.msrb.mxu1 %v358_v8  ;;  %415 = vmatpush.msra.mxu2 %v2691_v20 }
  0x21   : > { %2182 = vmatpush.msk.msrb.mxu0 %vm596_vm1, %v2839_v52  ;;  %2314 = vmatpush.msk.msra.mxu3 %vm596_vm1, %v2839_v52 }
  0x22   : > { %376 = vmatpush.msrb.mxu1 %v357_v9  ;;  %416 = vmatpush.msra.mxu2 %v2700_v21 }
  0x23   : > { %2167 = vmatmul.msk.f32.gmra.mxu0 %vm283_vm0, %v2623_v10  ;;  %2174 = vmatmul.msk.f32.vlgmr.msrb.gmra.mxu1 %vm283_vm0, %v2604_v5 }
  0x24   : > { %802 = vmatpush.msra.mxu1 %v2651_v14  ;;  %417 = vmatpush.msra.mxu2 %v2707_v22 }
  0x25   : > { %2191 = vmatpush.msk.msrb.mxu3 %vm596_vm1, %v2839_v52 }
  0x26   : > { %803 = vmatpush.msra.mxu1 %v2656_v15  ;;  %418 = vmatpush.msra.mxu2 %v2714_v23 }
  0x28   : > { %804 = vmatpush.msra.mxu1 %v2665_v16  ;;  %419 = vmatpush.msra.mxu2 %v2726_v25 }
  0x2a   : > { %805 = vmatpush.msra.mxu1 %v2672_v17  ;;  %420 = vmatpush.msra.mxu2 %v2741_v26 }
  0x2b   : > { %2168 = vmatmul.msk.f32.gmra.mxu0 %vm283_vm0, %v2630_v11  ;;  %2175 = vmatmul.msk.f32.gmra.mxu1 %vm283_vm0, %v2623_v10 }
  0x2c   : > { %806 = vmatpush.msra.mxu1 %v2679_v18  ;;  %421 = vmatpush.msra.mxu2 %v2748_v27 }
  0x2e   : > { %807 = vmatpush.msra.mxu1 %v2691_v20  ;;  %422 = vmatpush.msra.mxu2 %v2753_v28 }
  0x30   : > { %808 = vmatpush.msra.mxu1 %v2700_v21  ;;  %423 = vmatpush.msra.mxu2 %v2760_v29 }
  0x32   : > { %809 = vmatpush.msra.mxu1 %v2707_v22  ;;  %424 = vmatpush.msra.mxu2 %v2769_v30 }
  0x33   : > { %2169 = vmatmul.msk.f32.gmra.mxu0 %vm283_vm0, %v2637_v12  ;;  %2176 = vmatmul.msk.f32.gmra.mxu1 %vm283_vm0, %v2630_v11 }
  0x34   : > { %810 = vmatpush.msra.mxu1 %v2714_v23  ;;  %425 = vmatpush.msra.mxu2 %v2776_v31 }
  0x36   : > { %811 = vmatpush.msra.mxu1 %v2726_v25  ;;  %2208 = vmatpush.msk.msrb.mxu2 %vm596_vm1, %v2839_v52 }
  0x38   : > { %812 = vmatpush.msra.mxu1 %v2741_v26 }
  0x3a   : > { %813 = vmatpush.msra.mxu1 %v2748_v27 }
  0x3b   : > { %2177 = vmatmul.msk.f32.gmra.mxu1 %vm283_vm0, %v2637_v12  ;;  %2170 = vmatmul.msk.f32.gmra.mxu0 %vm283_vm0, %v2644_v13 }
  0x3c   : > { %814 = vmatpush.msra.mxu1 %v2753_v28 }
  0x3e   : > { %815 = vmatpush.msra.mxu1 %v2760_v29 }
  0x40   : > { %816 = vmatpush.msra.mxu1 %v2769_v30 }
  0x42   : > { %817 = vmatpush.msra.mxu1 %v2776_v31 }
  0x43   : > { %2178 = vmatmul.msk.f32.gmra.mxu1 %vm283_vm0, %v2644_v13  ;;  %2171 = vmatmul.msk.f32.gmra.mxu0 %vm283_vm0, %v2682_v19 }
  0x44   : > { %1251 = vmatpush.msrb.mxu1 %v2651_v14 }
  0x46   : > { %1252 = vmatpush.msrb.mxu1 %v2656_v15 }
  0x48   : > { %1253 = vmatpush.msrb.mxu1 %v2665_v16 }
  0x4a   : > { %1254 = vmatpush.msrb.mxu1 %v2672_v17 }
  0x4b   : > { %2179 = vmatmul.msk.f32.gmra.mxu1 %vm283_vm0, %v2682_v19  ;;  %2172 = vmatmul.msk.f32.gmra.mxu0 %vm283_vm0, %v2717_v24 }
  0x4c   : > { %1255 = vmatpush.msrb.mxu1 %v2679_v18 }
  0x4e   : > { %1256 = vmatpush.msrb.mxu1 %v2691_v20 }
  0x50   : > { %1257 = vmatpush.msrb.mxu1 %v2700_v21 }
  0x52   : > { %1258 = vmatpush.msrb.mxu1 %v2707_v22 }
  0x53   : > { %2180 = vmatmul.msk.f32.gmra.mxu1 %vm283_vm0, %v2717_v24 }
  0x54   : > { %1259 = vmatpush.msrb.mxu1 %v2714_v23 }
  0x56   : > { %1260 = vmatpush.msrb.mxu1 %v2726_v25 }
  0x58   : > { %1261 = vmatpush.msrb.mxu1 %v2741_v26 }
  0x5a   : > { %1262 = vmatpush.msrb.mxu1 %v2748_v27 }
  0x5b   : > { %2181 = vmatmul.msk.f32.gmra.mxu1 %vm283_vm0, %v2607_v6 }
  0x5c   : > { %1263 = vmatpush.msrb.mxu1 %v2753_v28 }
  0x5e   : > { %1264 = vmatpush.msrb.mxu1 %v2760_v29 }
  0x60   : > { %1265 = vmatpush.msrb.mxu1 %v2769_v30 }
  0x62   : > { %1266 = vmatpush.msrb.mxu1 %v2776_v31 }
  0x98   : > { %v325_v32 = vpop.f32.mrf.mxu0  ;;  %v346_v33 = vpop.f32.mrf.mxu1 }
  0x99   : > { %v2824_v47 = vmul.f32 0.03125, %v325_v32  ;;  %v2826_v48 = vmul.f32 0.03125, %v346_v33 }
  0x9b   : > { %v2834_v51 = vmul.f32 %v2826_v48, %v2826_v48  ;;  %v2843_v53 = vmul.f32 %v2824_v47, %v2824_v47 }
  0x9d   : > { %3566 = vst [vmem:[#allocation7_spill] sm:$0xff] %v2843_v53  ;;  %859 = vrot.lane.b32.xlu0 %v2843_v53, %s2492_s18 }
  0xa0   : > { %v328_v34 = vpop.f32.mrf.mxu0  ;;  %v2795_v35 = vpop.f32.mrf.mxu1 }
  0xa1   : > { %v402_v36 = vmul.f32 %v2795_v35, %v2795_v35  ;;  %v2849_v54 = vmul.f32 0.03125, %v328_v34 }
  0xa3   : > { %426 = vmatmul.f32.vlgmr.msra.gmra.mxu2 %v402_v36  ;;  %v2867_v57 = vmul.f32 %v2849_v54, %v2849_v54 }
  0xa4   : > { %2242 = vmatpush.msk.msra.mxu2 %vm596_vm1, %v2839_v52 }
  0xa5   : > { %3567 = vst [vmem:[#allocation8_spill] sm:$0xff] %v2867_v57  ;;  %861 = vrot.lane.b32.xlu0 %v2867_v57, %s2492_s18 }
  0xa8   : > { %v331_v37 = vpop.f32.mrf.mxu0  ;;  %v2800_v38 = vpop.f32.mrf.mxu1 }
  0xa9   : > { %v2802_v39 = vmul.f32 0.03125, %v331_v37  ;;  %v403_v40 = vmul.f32 %v2800_v38, %v2800_v38 }
  0xab   : > { %429 = vmatmul.f32.gmra.mxu2 %v403_v40  ;;  %v2808_v41 = vmul.f32 %v2802_v39, %v2802_v39 }
  0xad   : > { %3564 = vst [vmem:[#allocation5_spill] sm:$0xff] %v2808_v41  ;;  %863 = vrot.lane.b32.xlu1 %v2808_v41, %s2492_s18 }
  0xb0   : > { %v334_v42 = vpop.f32.mrf.mxu0  ;;  %v2812_v43 = vpop.f32.mrf.mxu1 }
  0xb1   : > { %v2814_v44 = vmul.f32 0.03125, %v334_v42  ;;  %v404_v45 = vmul.f32 %v2812_v43, %v2812_v43  ;;  %v752_v42 = vld [vmem:[%s3546_s1 + $0x68] sm:$0xff] }
  0xb2   : > { %765 = vmatpush.msra.mxu0 %v752_v42 }
  0xb3   : > { %432 = vmatmul.f32.gmra.mxu2 %v404_v45  ;;  %v2820_v46 = vmul.f32 %v2814_v44, %v2814_v44 }
  0xb5   : > { %3565 = vst [vmem:[#allocation6_spill] sm:$0xff] %v2820_v46  ;;  %865 = vrot.lane.b32.xlu1 %v2820_v46, %s2492_s18 }
  0xb8   : > { %v2828_v49 = vpop.f32.mrf.mxu1  ;;  %v337_v0 = vpop.f32.mrf.mxu0 }
  0xb9   : > { %v405_v50 = vmul.f32 %v2828_v49, %v2828_v49  ;;  %v2893_v7 = vmul.f32 0.03125, %v337_v0 }
  0xbb   : > { %435 = vmatmul.f32.gmra.mxu2 %v405_v50  ;;  %v2897_v32 = vmul.f32 %v2893_v7, %v2893_v7 }
  0xbd   : > { %873 = vrot.lane.b32.xlu1 %v2834_v51, %s2492_s18  ;;  %3569 = vst [vmem:[#allocation10_spill] sm:$0xff] %v2897_v32  ;;  %867 = vrot.lane.b32.xlu2 %v2897_v32, %s2492_s18 }
  0xc0   : > { %v2861_v55 = vpop.f32.mrf.mxu1  ;;  %v340_v1 = vpop.f32.mrf.mxu0 }
  0xc1   : > { %v406_v56 = vmul.f32 %v2861_v55, %v2861_v55  ;;  %v2902_v34 = vmul.f32 0.03125, %v340_v1 }
  0xc3   : > { %438 = vmatmul.f32.gmra.mxu2 %v406_v56  ;;  %v2909_v50 = vmul.f32 %v2902_v34, %v2902_v34 }
  0xc5   : > { %869 = vrot.lane.b32.xlu2 %v2909_v50, %s2492_s18 }
  0xc8   : > { %v2871_v58 = vpop.f32.mrf.mxu1  ;;  %v343_v2 = vpop.f32.mrf.mxu0 }
  0xc9   : > { %v407_v59 = vmul.f32 %v2871_v58, %v2871_v58  ;;  %v2883_v3 = vmul.f32 0.03125, %v343_v2  ;;  %v751_v2 = vld [vmem:[%s3546_s1 + $0x48] sm:$0xff] }
  0xca   : > { %766 = vmatpush.msra.mxu0 %v751_v2 }
  0xcb   : > { %441 = vmatmul.f32.gmra.mxu2 %v407_v59  ;;  %v2887_v4 = vmul.f32 %v2883_v3, %v2883_v3 }
  0xcd   : > { %871 = vrot.lane.b32.xlu0 %v2887_v4, %s2492_s18 }
  0xd0   : > { %v2875_v60 = vpop.f32.mrf.mxu1 }
  0xd1   : > { %v408_v61 = vmul.f32 %v2875_v60, %v2875_v60 }
  0xd3   : > { %444 = vmatmul.f32.gmra.mxu2 %v408_v61 }
  0xd5   : > { %1300 = vrot.lane.b32.xlu0 %v2843_v53, %s2493_s26 }
  0xd8   : > { %v2879_v62 = vpop.f32.mrf.mxu1 }
  0xd9   : > { %3568 = vst [vmem:[#allocation9_spill] sm:$0xff] %v2879_v62  ;;  %v409_v63 = vmul.f32 %v2879_v62, %v2879_v62 }
  0xdb   : > { %447 = vmatmul.f32.gmra.mxu2 %v409_v63 }
 0x126   : > { %v427_v8 = vpop.f32.mrf.mxu2 }
 0x127   : > { %v451_v9 = vmul.f32 0.03125, %v427_v8 }
 0x129   : > { %v467_v33 = vsub.f32 %v451_v9, %v2843_v53 }
 0x12b   : > { %v475_v36 = vmax.f32 %v467_v33, 0.0 }
 0x12d   : > { %v483_v37 = vadd.f32 1e-05, %v475_v36 }
 0x12e   : > { %v430_v40 = vpop.f32.mrf.mxu2 }
 0x12f   : > { %2362 = vrsqrt.f32 %v483_v37  ;;  %v452_v45 = vmul.f32 0.03125, %v430_v40  ;;  %vm497_vm3 = vweird.f32 %v483_v37 }
 0x131   : > { %v468_v56 = vsub.f32 %v452_v45, %v2867_v57 }
 0x133   : > { %v476_v59 = vmax.f32 %v468_v56, 0.0 }
 0x135   : > { %v2363_v61 = vpop.eup %2362  ;;  %v484_v63 = vadd.f32 1e-05, %v476_v59  ;;  %v750_v59 = vld [vmem:[%s3546_s1 + $0x28] sm:$0xff] }
 0x136   : > { %v492_v0 = vmul.f32 %v2363_v61, %v483_v37  ;;  %v433_v1 = vpop.f32.mrf.mxu2  ;;  %vm498_vm2 = vweird.f32 %v2363_v61  ;;  %767 = vmatpush.msra.mxu0 %v750_v59 }
 0x137   : > { %2364 = vrsqrt.f32 %v484_v63  ;;  %v453_v8 = vmul.f32 0.03125, %v433_v1  ;;  %vm499_vm5 = vmor %vm497_vm3, %vm498_vm2  ;;  %v749_v1 = vld [vmem:[%s3546_s1 + $0x8] sm:$0xff]  ;;  %vm507_vm7 = vweird.f32 %v484_v63 }
 0x138   : > { %v493_v9 = vmul.f32 %v2363_v61, %v492_v0  ;;  %768 = vmatpush.msra.mxu0 %v749_v1 }
 0x139   : > { %v469_v33 = vsub.f32 %v453_v8, %v2808_v41 }
 0x13a   : > { %v494_v36 = vmul.f32 0.5, %v493_v9 }
 0x13b   : > { %v477_v40 = vmax.f32 %v469_v33, 0.0 }
 0x13c   : > { %v495_v42 = vsub.f32 1.5, %v494_v36 }
 0x13d   : > { %v2365_v45 = vpop.eup %2364  ;;  %v485_v56 = vadd.f32 1e-05, %v477_v40 }
 0x13e   : > { %v502_v53 = vmul.f32 %v2365_v45, %v484_v63  ;;  %v436_v57 = vpop.f32.mrf.mxu2  ;;  %v496_v62 = vmul.f32 %v2363_v61, %v495_v42  ;;  %vm508_vm6 = vweird.f32 %v2365_v45 }
 0x13f   : > { %2366 = vrsqrt.f32 %v485_v56  ;;  %v454_v0 = vmul.f32 0.03125, %v436_v57  ;;  %vm509_vm8 = vmor %vm507_vm7, %vm508_vm6  ;;  %vm517_vm10 = vweird.f32 %v485_v56 }
 0x140   : > { %v2924_v2 = vsel %vm499_vm5, %v2363_v61, %v496_v62  ;;  %v503_v8 = vmul.f32 %v2365_v45, %v502_v53 }
 0x141   : > { %v470_v9 = vsub.f32 %v454_v0, %v2820_v46  ;;  %2183 = vmatmul.msk.f32.vlgmr.msrb.gmra.mxu0 %vm571_vm4, %v2924_v2 }
 0x142   : > { %v504_v33 = vmul.f32 0.5, %v503_v8 }
 0x143   : > { %v478_v37 = vmax.f32 %v470_v9, 0.0 }
 0x144   : > { %v505_v36 = vsub.f32 1.5, %v504_v33 }
 0x145   : > { %v2367_v40 = vpop.eup %2366  ;;  %v486_v57 = vadd.f32 1e-05, %v478_v37 }
 0x146   : > { %v512_v42 = vmul.f32 %v2367_v40, %v485_v56  ;;  %v439_v59 = vpop.f32.mrf.mxu2  ;;  %v506_v41 = vmul.f32 %v2365_v45, %v505_v36  ;;  %vm518_vm9 = vweird.f32 %v2367_v40 }
 0x147   : > { %2368 = vrsqrt.f32 %v486_v57  ;;  %v455_v62 = vmul.f32 0.03125, %v439_v59  ;;  %vm519_vm11 = vmor %vm517_vm10, %vm518_vm9  ;;  %vm527_vm13 = vweird.f32 %v486_v57 }
 0x148   : > { %v2929_v53 = vsel %vm509_vm8, %v2365_v45, %v506_v41  ;;  %v513_v61 = vmul.f32 %v2367_v40, %v512_v42 }
 0x149   : > { %v471_v0 = vsub.f32 %v455_v62, %v2897_v32  ;;  %2184 = vmatmul.msk.f32.gmra.mxu0 %vm571_vm4, %v2929_v53 }
 0x14a   : > { %v514_v1 = vmul.f32 0.5, %v513_v61 }
 0x14b   : > { %v479_v8 = vmax.f32 %v471_v0, 0.0 }
 0x14c   : > { %v515_v9 = vsub.f32 1.5, %v514_v1 }
 0x14d   : > { %v2369_v33 = vpop.eup %2368  ;;  %v487_v37 = vadd.f32 1e-05, %v479_v8 }
 0x14e   : > { %v522_v46 = vmul.f32 %v2369_v33, %v486_v57  ;;  %v442_v36 = vpop.f32.mrf.mxu2  ;;  %v516_v63 = vmul.f32 %v2367_v40, %v515_v9  ;;  %vm528_vm12 = vweird.f32 %v2369_v33 }
 0x14f   : > { %2370 = vrsqrt.f32 %v487_v37  ;;  %v456_v59 = vmul.f32 0.03125, %v442_v36  ;;  %vm529_vm14 = vmor %vm527_vm13, %vm528_vm12  ;;  %vm537_vm15 = vweird.f32 %v487_v37 }
 0x150   : > { %v2934_v41 = vsel %vm519_vm11, %v2367_v40, %v516_v63  ;;  %v523_v45 = vmul.f32 %v2369_v33, %v522_v46 }
 0x151   : > { %v472_v42 = vsub.f32 %v456_v59, %v2909_v50  ;;  %2185 = vmatmul.msk.f32.gmra.mxu0 %vm571_vm4, %v2934_v41 }
 0x152   : > { %v524_v62 = vmul.f32 0.5, %v523_v45 }
 0x153   : > { %v480_v61 = vmax.f32 %v472_v42, 0.0 }
 0x154   : > { %v525_v0 = vsub.f32 1.5, %v524_v62 }
 0x155   : > { %v2371_v1 = vpop.eup %2370  ;;  %v488_v8 = vadd.f32 1e-05, %v480_v61 }
 0x156   : > { %v532_v32 = vmul.f32 %v2371_v1, %v487_v37  ;;  %v445_v9 = vpop.f32.mrf.mxu2  ;;  %v526_v56 = vmul.f32 %v2369_v33, %v525_v0  ;;  %vm538_vm2 = vweird.f32 %v2371_v1 }
 0x157   : > { %2372 = vrsqrt.f32 %v488_v8  ;;  %v457_v36 = vmul.f32 0.03125, %v445_v9  ;;  %vm539_vm3 = vmor %vm537_vm15, %vm538_vm2  ;;  %vm547_vm5 = vweird.f32 %v488_v8 }
 0x158   : > { %v2939_v40 = vsel %vm529_vm14, %v2369_v33, %v526_v56  ;;  %v533_v46 = vmul.f32 %v2371_v1, %v532_v32 }
 0x159   : > { %v473_v63 = vsub.f32 %v457_v36, %v2887_v4  ;;  %2186 = vmatmul.msk.f32.gmra.mxu0 %vm571_vm4, %v2939_v40 }
 0x15a   : > { %v534_v59 = vmul.f32 0.5, %v533_v46 }
 0x15b   : > { %v481_v45 = vmax.f32 %v473_v63, 0.0 }
 0x15c   : > { %v535_v42 = vsub.f32 1.5, %v534_v59 }
 0x15d   : > { %v2373_v62 = vpop.eup %2372  ;;  %v489_v61 = vadd.f32 1e-05, %v481_v45 }
 0x15e   : > { %v542_v57 = vmul.f32 %v2373_v62, %v488_v8  ;;  %v448_v0 = vpop.f32.mrf.mxu2  ;;  %v536_v9 = vmul.f32 %v2371_v1, %v535_v42  ;;  %vm548_vm6 = vweird.f32 %v2373_v62 }
 0x15f   : > { %2374 = vrsqrt.f32 %v489_v61  ;;  %v458_v33 = vmul.f32 0.03125, %v448_v0  ;;  %vm549_vm7 = vmor %vm547_vm5, %vm548_vm6  ;;  %vm557_vm8 = vweird.f32 %v489_v61 }
 0x160   : > { %v2944_v56 = vsel %vm539_vm3, %v2371_v1, %v536_v9  ;;  %v543_v32 = vmul.f32 %v2373_v62, %v542_v57 }
 0x161   : > { %v474_v36 = vsub.f32 %v458_v33, %v2834_v51  ;;  %2187 = vmatmul.msk.f32.vlgmr.msra.gmra.mxu3 %vm571_vm4, %v2944_v56  ;;  %2200 = vmatmul.msk.f32.vlgmr.msra.gmra.mxu0 %vm283_vm0, %v2604_v5 }
 0x162   : > { %v544_v37 = vmul.f32 0.5, %v543_v32  ;;  %2217 = vmatpush.msk.msra.mxu3 %vm596_vm1, %v2839_v52 }
 0x163   : > { %v482_v46 = vmax.f32 %v474_v36, 0.0 }
 0x164   : > { %v545_v63 = vsub.f32 1.5, %v544_v37 }
 0x165   : > { %v2375_v59 = vpop.eup %2374  ;;  %v490_v1 = vadd.f32 1e-05, %v482_v46 }
 0x166   : > { %v552_v45 = vmul.f32 %v2375_v59, %v489_v61  ;;  %v546_v42 = vmul.f32 %v2373_v62, %v545_v63  ;;  %vm558_vm9 = vweird.f32 %v2375_v59 }
 0x167   : > { %2376 = vrsqrt.f32 %v490_v1  ;;  %vm559_vm10 = vmor %vm557_vm8, %vm558_vm9  ;;  %vm567_vm12 = vweird.f32 %v490_v1 }
 0x168   : > { %v550_v57 = vsel %vm549_vm7, %v2373_v62, %v546_v42  ;;  %v553_v0 = vmul.f32 %v2375_v59, %v552_v45  ;;  %v1200_v42 = vld [vmem:[%s3546_s1 + $0x50] sm:$0xff] }
 0x169   : > { %2188 = vmatmul.msk.f32.gmra.mxu3 %vm571_vm4, %v550_v57  ;;  %2201 = vmatmul.msk.f32.gmra.mxu0 %vm283_vm0, %v2623_v10 }
 0x16a   : > { %v554_v8 = vmul.f32 0.5, %v553_v0  ;;  %v1198_v0 = vld [vmem:[%s3546_s1 + $0x10] sm:$0xff] }
 0x16c   : > { %v555_v9 = vsub.f32 1.5, %v554_v8  ;;  %v641_v8 = vmul.f32 %v2924_v2, %v2824_v47  ;;  %v643_v2 = vmul.f32 %v2934_v41, %v2802_v39  ;;  %v646_v41 = vmul.f32 %v550_v57, %v2902_v34 }
 0x16d   : > { %v2377_v33 = vpop.eup %2376 }
 0x16e   : > { %v562_v32 = vmul.f32 %v2377_v33, %v490_v1  ;;  %v556_v36 = vmul.f32 %v2375_v59, %v555_v9  ;;  %vm568_vm11 = vweird.f32 %v2377_v33  ;;  %v1199_v1 = vld [vmem:[%s3546_s1 + $0x30] sm:$0xff]  ;;  %v642_v9 = vmul.f32 %v2929_v53, %v2849_v54 }
 0x16f   : > { %vm569_vm13 = vmor %vm567_vm12, %vm568_vm11  ;;  %v645_v53 = vmul.f32 %v2944_v56, %v2893_v7 }
 0x170   : > { %v560_v37 = vsel %vm559_vm10, %v2375_v59, %v556_v36  ;;  %v563_v46 = vmul.f32 %v2377_v33, %v562_v32  ;;  %v1201_v59 = vld [vmem:[%s3546_s1 + $0x70] sm:$0xff] }
 0x171   : > { %2189 = vmatmul.msk.f32.gmra.mxu3 %vm571_vm4, %v560_v37  ;;  %2202 = vmatmul.msk.f32.gmra.mxu0 %vm283_vm0, %v2630_v11 }
 0x172   : > { %v564_v62 = vmul.f32 0.5, %v563_v46  ;;  %1214 = vmatpush.msrb.mxu0 %v1201_v59 }
 0x174   : > { %v565_v63 = vsub.f32 1.5, %v564_v62  ;;  %1215 = vmatpush.msrb.mxu0 %v1200_v42 }
 0x176   : > { %v566_v45 = vmul.f32 %v2377_v33, %v565_v63  ;;  %1216 = vmatpush.msrb.mxu0 %v1199_v1 }
 0x178   : > { %v570_v61 = vsel %vm569_vm13, %v2377_v33, %v566_v45  ;;  %1217 = vmatpush.msrb.mxu0 %v1198_v0  ;;  %v644_v33 = vmul.f32 %v2939_v40, %v2814_v44  ;;  %v647_v40 = vmul.f32 %v560_v37, %v2883_v3 }
 0x179   : > { %2190 = vmatmul.msk.f32.gmra.mxu3 %vm571_vm4, %v570_v61  ;;  %2203 = vmatmul.msk.f32.gmra.mxu0 %vm283_vm0, %v2637_v12  ;;  %v648_v56 = vmul.f32 %v570_v61, %v2826_v48 }
 0x181   : > { %2192 = vmatmul.msk.f32.vlgmr.msrb.gmra.mxu3 %vm571_vm4, %v641_v8  ;;  %2204 = vmatmul.msk.f32.gmra.mxu0 %vm283_vm0, %v2644_v13 }
 0x182   : > { %2251 = vmatpush.msk.msrb.mxu3 %vm596_vm1, %v2839_v52 }
 0x189   : > { %2193 = vmatmul.msk.f32.gmra.mxu3 %vm571_vm4, %v642_v9  ;;  %2205 = vmatmul.msk.f32.gmra.mxu0 %vm283_vm0, %v2682_v19 }
 0x191   : > { %2194 = vmatmul.msk.f32.gmra.mxu3 %vm571_vm4, %v643_v2  ;;  %2206 = vmatmul.msk.f32.gmra.mxu0 %vm283_vm0, %v2717_v24 }
 0x199   : > { %2195 = vmatmul.msk.f32.gmra.mxu3 %vm571_vm4, %v644_v33  ;;  %2207 = vmatmul.msk.f32.gmra.mxu0 %vm283_vm0, %v2607_v6 }
 0x1a1   : > { %2196 = vmatmul.msk.f32.gmra.mxu3 %vm571_vm4, %v645_v53  ;;  %2234 = vmatmul.msk.f32.vlgmr.msrb.gmra.mxu0 %vm283_vm0, %v2604_v5 }
 0x1a9   : > { %2197 = vmatmul.msk.f32.gmra.mxu3 %vm571_vm4, %v646_v41  ;;  %2235 = vmatmul.msk.f32.gmra.mxu0 %vm283_vm0, %v2623_v10 }
 0x1b1   : > { %2198 = vmatmul.msk.f32.gmra.mxu3 %vm571_vm4, %v647_v40  ;;  %2236 = vmatmul.msk.f32.gmra.mxu0 %vm283_vm0, %v2630_v11 }
 0x1b9   : > { %2199 = vmatmul.msk.f32.gmra.mxu3 %vm571_vm4, %v648_v56  ;;  %2237 = vmatmul.msk.f32.gmra.mxu0 %vm283_vm0, %v2637_v12 }
 0x1be   : > { %v617_v57 = vpop.f32.mrf.mxu0 }
 0x1c1   : > { %2238 = vmatmul.msk.f32.gmra.mxu0 %vm283_vm0, %v2644_v13 }
 0x1c6   : > { %v3015_v32 = vpop.f32.mrf.mxu0 }
 0x1c9   : > { %2239 = vmatmul.msk.f32.gmra.mxu0 %vm283_vm0, %v2682_v19 }
 0x1ce   : > { %v3019_v36 = vpop.f32.mrf.mxu0 }
 0x1cf   : > { %v716_v2 = vmul.f32 %v3019_v36, %v2812_v43 }
 0x1d1   : > { %2240 = vmatmul.msk.f32.gmra.mxu0 %vm283_vm0, %v2717_v24 }
 0x1d6   : > { %v3023_v37 = vpop.f32.mrf.mxu0 }
 0x1d7   : > { %v717_v40 = vmul.f32 %v3023_v37, %v2828_v49 }
 0x1d9   : > { %2241 = vmatmul.msk.f32.gmra.mxu0 %vm283_vm0, %v2607_v6 }
 0x1de   : > { %v3027_v46 = vpop.f32.mrf.mxu0 }
 0x1df   : > { %v794_v62 = vmul.f32 %v3027_v46, %v3027_v46 }
 0x1e1   : > { %818 = vmatmul.f32.vlgmr.msra.gmra.mxu1 %v794_v62 }
 0x1e2   : > { %1692 = vmatpush.msra.mxu1 %v2651_v14  ;;  %v1642_v14 = vld [vmem:[%s3546_s1 + $0x78] sm:$0xff] }
 0x1e3   : > { %1655 = vmatpush.msra.mxu0 %v1642_v14 }
 0x1e4   : > { %v3032_v63 = vpop.f32.mrf.mxu3  ;;  %1693 = vmatpush.msra.mxu1 %v2656_v15 }
 0x1e5   : > { %v718_v36 = vmul.f32 %v3032_v63, %v2861_v55 }
 0x1e6   : > { %v3035_v45 = vpop.f32.mrf.mxu0  ;;  %1694 = vmatpush.msra.mxu1 %v2665_v16  ;;  %v1641_v16 = vld [vmem:[%s3546_s1 + $0x58] sm:$0xff] }
 0x1e7   : > { %v795_v61 = vmul.f32 %v3035_v45, %v3035_v45  ;;  %1656 = vmatpush.msra.mxu0 %v1641_v16 }
 0x1e8   : > { %1695 = vmatpush.msra.mxu1 %v2672_v17 }
 0x1e9   : > { %821 = vmatmul.f32.gmra.mxu1 %v795_v61 }
 0x1ea   : > { %1696 = vmatpush.msra.mxu1 %v2679_v18  ;;  %v1640_v18 = vld [vmem:[%s3546_s1 + $0x38] sm:$0xff] }
 0x1eb   : > { %1657 = vmatpush.msra.mxu0 %v1640_v18 }
 0x1ec   : > { %v3042_v59 = vpop.f32.mrf.mxu3  ;;  %1697 = vmatpush.msra.mxu1 %v2691_v20  ;;  %v1639_v20 = vld [vmem:[%s3546_s1 + $0x18] sm:$0xff] }
 0x1ed   : > { %1658 = vmatpush.msra.mxu0 %v1639_v20  ;;  %v719_v14 = vmul.f32 %v3042_v59, %v2871_v58 }
 0x1ee   : > { %v3048_v15 = vpop.f32.mrf.mxu0  ;;  %1698 = vmatpush.msra.mxu1 %v2700_v21  ;;  %2268 = vmatmul.msk.f32.vlgmr.msra.gmra.mxu0 %vm283_vm0, %v2604_v5 }
 0x1ef   : > { %v796_v17 = vmul.f32 %v3048_v15, %v3048_v15 }
 0x1f0   : > { %1699 = vmatpush.msra.mxu1 %v2707_v22 }
 0x1f1   : > { %824 = vmatmul.f32.gmra.mxu1 %v796_v17 }
 0x1f2   : > { %1700 = vmatpush.msra.mxu1 %v2714_v23 }
 0x1f4   : > { %v3064_v21 = vpop.f32.mrf.mxu3  ;;  %1701 = vmatpush.msra.mxu1 %v2726_v25 }
 0x1f5   : > { %v720_v16 = vmul.f32 %v3064_v21, %v2875_v60 }
 0x1f6   : > { %v3069_v42 = vpop.f32.mrf.mxu0  ;;  %1702 = vmatpush.msra.mxu1 %v2741_v26  ;;  %2269 = vmatmul.msk.f32.gmra.mxu0 %vm283_vm0, %v2623_v10  ;;  %v714_v26 = vmul.f32 %v617_v57, %v2795_v35  ;;  %v2361_v10 = vld [vmem:[%s3550_s5] ss:$0 sm:$0xff]  ;;  %v715_v35 = vmul.f32 %v3015_v32, %v2800_v38 }
 0x1f7   : > { %v797_v22 = vmul.f32 %v3069_v42, %v3069_v42 }
 0x1f8   : > { %1703 = vmatpush.msra.mxu1 %v2748_v27 }
 0x1f9   : > { %827 = vmatmul.f32.gmra.mxu1 %v797_v22  ;;  %v3570_v22 = vld [vmem:[#allocation9_spill] sm:$0xff] }
 0x1fa   : > { %1704 = vmatpush.msra.mxu1 %v2753_v28 }
 0x1fc   : > { %v3076_v23 = vpop.f32.mrf.mxu3  ;;  %1705 = vmatpush.msra.mxu1 %v2760_v29 }
 0x1fd   : > { %v721_v58 = vmul.f32 %v3076_v23, %v3570_v22 }
 0x1fe   : > { %v3081_v5 = vpop.f32.mrf.mxu0  ;;  %1706 = vmatpush.msra.mxu1 %v2769_v30  ;;  %2270 = vmatmul.msk.f32.gmra.mxu0 %vm283_vm0, %v2630_v11 }
 0x1ff   : > { %v798_v25 = vmul.f32 %v3081_v5, %v3081_v5 }
 0x200   : > { %1707 = vmatpush.msra.mxu1 %v2776_v31 }
 0x201   : > { %830 = vmatmul.f32.gmra.mxu1 %v798_v25 }
 0x204   : > { %v690_v27 = vpop.f32.mrf.mxu3 }
 0x205   : > { %v722_v28 = vsub.f32 %v714_v26, %v690_v27 }
 0x206   : > { %v3096_v29 = vpop.f32.mrf.mxu0  ;;  %2271 = vmatmul.msk.f32.gmra.mxu0 %vm283_vm0, %v2637_v12 }
 0x207   : > { %v733_v30 = vadd.f32 %v2361_v10, %v722_v28  ;;  %v799_v31 = vmul.f32 %v3096_v29, %v3096_v29 }
 0x209   : > { %741 = vst [vmem:[%s3100_s9] sm:$0xff] %v733_v30  ;;  %833 = vmatmul.f32.gmra.mxu1 %v799_v31  ;;  %v860_v31 = vpop.permute.xlu0 %859 }
 0x20c   : > { %v693_v1 = vpop.f32.mrf.mxu3 }
 0x20d   : > { %v723_v11 = vsub.f32 %v715_v35, %v693_v1 }
 0x20e   : > { %v3107_v0 = vpop.f32.mrf.mxu0  ;;  %2272 = vmatmul.msk.f32.gmra.mxu0 %vm283_vm0, %v2644_v13 }
 0x20f   : > { %v734_v8 = vadd.f32 %v2361_v10, %v723_v11  ;;  %v800_v9 = vmul.f32 %v3107_v0, %v3107_v0 }
 0x211   : > { %742 = vst [vmem:[%s3100_s9 + $0x20] sm:$0xff] %v734_v8  ;;  %836 = vmatmul.f32.gmra.mxu1 %v800_v9 }
 0x214   : > { %v696_v33 = vpop.f32.mrf.mxu3 }
 0x215   : > { %v724_v38 = vsub.f32 %v716_v2, %v696_v33 }
 0x216   : > { %v3116_v53 = vpop.f32.mrf.mxu0  ;;  %2273 = vmatmul.msk.f32.gmra.mxu0 %vm283_vm0, %v2682_v19 }
 0x217   : > { %v735_v12 = vadd.f32 %v2361_v10, %v724_v38  ;;  %v801_v41 = vmul.f32 %v3116_v53, %v3116_v53 }
 0x219   : > { %743 = vst [vmem:[%s3100_s9 + $0x40] sm:$0xff] %v735_v12  ;;  %839 = vmatmul.f32.gmra.mxu1 %v801_v41  ;;  %v862_v41 = vpop.permute.xlu0 %861 }
 0x21c   : > { %v699_v56 = vpop.f32.mrf.mxu3 }
 0x21d   : > { %v725_v43 = vsub.f32 %v717_v40, %v699_v56 }
 0x21e   : > { %v3125_v57 = vpop.f32.mrf.mxu0  ;;  %2274 = vmatmul.msk.f32.gmra.mxu0 %vm283_vm0, %v2717_v24 }
 0x21f   : > { %v736_v13 = vadd.f32 %v2361_v10, %v725_v43  ;;  %v1243_v32 = vmul.f32 %v3125_v57, %v3125_v57 }
 0x221   : > { %744 = vst [vmem:[%s3100_s9 + $0x60] sm:$0xff] %v736_v13  ;;  %1267 = vmatmul.f32.vlgmr.msrb.gmra.mxu1 %v1243_v32 }
 0x224   : > { %v702_v62 = vpop.f32.mrf.mxu3 }
 0x225   : > { %v726_v49 = vsub.f32 %v718_v36, %v702_v62  ;;  %v864_v62 = vpop.permute.xlu1 %863 }
 0x226   : > { %v3134_v19 = vpop.f32.mrf.mxu0  ;;  %2275 = vmatmul.msk.f32.gmra.mxu0 %vm283_vm0, %v2607_v6 }
 0x227   : > { %v737_v37 = vadd.f32 %v2361_v10, %v726_v49  ;;  %v1244_v61 = vmul.f32 %v3134_v19, %v3134_v19 }
 0x229   : > { %745 = vst [vmem:[%s3100_s9 + $0x80] sm:$0xff] %v737_v37  ;;  %1270 = vmatmul.f32.gmra.mxu1 %v1244_v61 }
 0x22c   : > { %v705_v55 = vpop.f32.mrf.mxu3 }
 0x22d   : > { %v727_v63 = vsub.f32 %v719_v14, %v705_v55 }
 0x22e   : > { %v3150_v27 = vpop.f32.mrf.mxu0 }
 0x22f   : > { %v738_v24 = vadd.f32 %v2361_v10, %v727_v63  ;;  %v1245_v6 = vmul.f32 %v3150_v27, %v3150_v27 }
 0x231   : > { %746 = vst [vmem:[%s3100_s9 + $0xa0] sm:$0xff] %v738_v24  ;;  %1273 = vmatmul.f32.gmra.mxu1 %v1245_v6  ;;  %v866_v6 = vpop.permute.xlu1 %865 }
 0x234   : > { %v708_v17 = vpop.f32.mrf.mxu3 }
 0x235   : > { %v728_v18 = vsub.f32 %v720_v16, %v708_v17 }
 0x236   : > { %v3154_v28 = vpop.f32.mrf.mxu0 }
 0x237   : > { %v739_v20 = vadd.f32 %v2361_v10, %v728_v18  ;;  %v1246_v60 = vmul.f32 %v3154_v28, %v3154_v28 }
 0x239   : > { %747 = vst [vmem:[%s3100_s9 + $0xc0] sm:$0xff] %v739_v20  ;;  %1276 = vmatmul.f32.gmra.mxu1 %v1246_v60 }
 0x23c   : > { %v711_v59 = vpop.f32.mrf.mxu3 }
 0x23d   : > { %v729_v25 = vsub.f32 %v721_v58, %v711_v59 }
 0x23e   : > { %v3158_v21 = vpop.f32.mrf.mxu0 }
 0x23f   : > { %v740_v26 = vadd.f32 %v2361_v10, %v729_v25  ;;  %v1247_v23 = vmul.f32 %v3158_v21, %v3158_v21 }
 0x241   : > { %748 = vst [vmem:[%s3100_s9 + $0xe0] sm:$0xff] %v740_v26  ;;  %1279 = vmatmul.f32.gmra.mxu1 %v1247_v23 }
 0x246   : > { %v3162_v10 = vpop.f32.mrf.mxu0 }
 0x247   : > { %v1248_v30 = vmul.f32 %v3162_v10, %v3162_v10 }
 0x249   : > { %1282 = vmatmul.f32.gmra.mxu1 %v1248_v30 }
 0x24e   : > { %v3166_v8 = vpop.f32.mrf.mxu0 }
 0x24f   : > { %v1249_v2 = vmul.f32 %v3166_v8, %v3166_v8 }
 0x251   : > { %1285 = vmatmul.f32.gmra.mxu1 %v1249_v2 }
 0x256   : > { %v3170_v56 = vpop.f32.mrf.mxu0 }
 0x257   : > { %v1250_v13 = vmul.f32 %v3170_v56, %v3170_v56 }
 0x259   : > { %1288 = vmatmul.f32.gmra.mxu1 %v1250_v13 }
 0x25e   : > { %v819_v35 = vpop.f32.mrf.mxu1 }
 0x25f   : > { %v843_v1 = vmul.f32 0.03125, %v819_v35 }
 0x261   : > { %v883_v11 = vsub.f32 %v843_v1, %v860_v31 }
 0x263   : > { %v891_v9 = vmax.f32 %v883_v11, 0.0 }
 0x265   : > { %v899_v33 = vadd.f32 1e-05, %v891_v9 }
 0x266   : > { %v822_v38 = vpop.f32.mrf.mxu1 }
 0x267   : > { %2378 = vrsqrt.f32 %v899_v33  ;;  %v844_v12 = vmul.f32 0.03125, %v822_v38  ;;  %vm913_vm14 = vweird.f32 %v899_v33  ;;  %v868_v38 = vpop.permute.xlu2 %867 }
 0x269   : > { %v884_v40 = vsub.f32 %v844_v12, %v862_v41 }
 0x26b   : > { %v892_v43 = vmax.f32 %v884_v40, 0.0  ;;  %v3174_v24 = vpop.f32.mrf.mxu0 }
 0x26c   : > { %v1684_v17 = vmul.f32 %v3174_v24, %v3174_v24 }
 0x26d   : > { %v2379_v32 = vpop.eup %2378  ;;  %v900_v36 = vadd.f32 1e-05, %v892_v43 }
 0x26e   : > { %v908_v49 = vmul.f32 %v2379_v32, %v899_v33  ;;  %v825_v37 = vpop.f32.mrf.mxu1  ;;  %vm914_vm0 = vweird.f32 %v2379_v32  ;;  %1708 = vmatmul.f32.vlgmr.msra.gmra.mxu1 %v1684_v17 }
 0x26f   : > { %2380 = vrsqrt.f32 %v900_v36  ;;  %v845_v61 = vmul.f32 0.03125, %v825_v37  ;;  %vm915_vm15 = vmor %vm913_vm14, %vm914_vm0  ;;  %vm923_vm3 = vweird.f32 %v900_v36 }
 0x270   : > { %v909_v14 = vmul.f32 %v2379_v32, %v908_v49 }
 0x271   : > { %v885_v55 = vsub.f32 %v845_v61, %v864_v62  ;;  %v3571_v62 = vld [vmem:[#allocation8_spill] sm:$0xff] }
 0x272   : > { %v910_v63 = vmul.f32 0.5, %v909_v14 }
 0x273   : > { %v893_v16 = vmax.f32 %v885_v55, 0.0  ;;  %v3180_v35 = vpop.f32.mrf.mxu0 }
 0x274   : > { %v911_v18 = vsub.f32 1.5, %v910_v63  ;;  %v1685_v11 = vmul.f32 %v3180_v35, %v3180_v35 }
 0x275   : > { %v2381_v20 = vpop.eup %2380  ;;  %v901_v22 = vadd.f32 1e-05, %v893_v16 }
 0x276   : > { %v918_v58 = vmul.f32 %v2381_v20, %v900_v36  ;;  %v828_v59 = vpop.f32.mrf.mxu1  ;;  %v912_v25 = vmul.f32 %v2379_v32, %v911_v18  ;;  %vm924_vm2 = vweird.f32 %v2381_v20  ;;  %1711 = vmatmul.f32.gmra.mxu1 %v1685_v11 }
 0x277   : > { %2382 = vrsqrt.f32 %v901_v22  ;;  %v846_v26 = vmul.f32 0.03125, %v828_v59  ;;  %vm925_vm5 = vmor %vm923_vm3, %vm924_vm2  ;;  %vm933_vm7 = vweird.f32 %v901_v22 }
 0x278   : > { %v916_v60 = vsel %vm915_vm15, %v2379_v32, %v912_v25  ;;  %v919_v23 = vmul.f32 %v2381_v20, %v918_v58  ;;  %v870_v58 = vpop.permute.xlu2 %869 }
 0x279   : > { %v886_v30 = vsub.f32 %v846_v26, %v866_v6  ;;  %1052 = vrot.lane.b32.xlu2 %v916_v60, %s2494_s10  ;;  %2209 = vmatmul.msk.f32.vlgmr.msrb.gmra.mxu2 %vm571_vm4, %v916_v60  ;;  %v3572_v6 = vld [vmem:[#allocation5_spill] sm:$0xff] }
 0x27a   : > { %v920_v31 = vmul.f32 0.5, %v919_v23  ;;  %2276 = vmatpush.msk.msrb.mxu2 %vm596_vm1, %v2839_v52 }
 0x27b   : > { %v894_v1 = vmax.f32 %v886_v30, 0.0  ;;  %v3190_v37 = vpop.f32.mrf.mxu0 }
 0x27c   : > { %v921_v9 = vsub.f32 1.5, %v920_v31  ;;  %v1686_v36 = vmul.f32 %v3190_v37, %v3190_v37 }
 0x27d   : > { %v2383_v2 = vpop.eup %2382  ;;  %v902_v33 = vadd.f32 1e-05, %v894_v1 }
 0x27e   : > { %v928_v12 = vmul.f32 %v2383_v2, %v901_v22  ;;  %v831_v41 = vpop.f32.mrf.mxu1  ;;  %v922_v40 = vmul.f32 %v2381_v20, %v921_v9  ;;  %vm934_vm6 = vweird.f32 %v2383_v2  ;;  %1714 = vmatmul.f32.gmra.mxu1 %v1686_v36 }
 0x27f   : > { %2384 = vrsqrt.f32 %v902_v33  ;;  %v847_v43 = vmul.f32 0.03125, %v831_v41  ;;  %vm935_vm8 = vmor %vm933_vm7, %vm934_vm6  ;;  %vm943_vm10 = vweird.f32 %v902_v33  ;;  %v872_v41 = vpop.permute.xlu0 %871 }
 0x280   : > { %v926_v13 = vsel %vm925_vm5, %v2381_v20, %v922_v40  ;;  %v929_v32 = vmul.f32 %v2383_v2, %v928_v12 }
 0x281   : > { %v887_v52 = vsub.f32 %v847_v43, %v868_v38  ;;  %1302 = vrot.lane.b32.xlu2 %v3571_v62, %s2493_s26  ;;  %1054 = vrot.lane.b32.xlu1 %v926_v13, %s2494_s10 }
 0x282   : > { %2210 = vmatmul.msk.f32.gmra.mxu2 %vm571_vm4, %v926_v13  ;;  %v930_v49 = vmul.f32 0.5, %v929_v32  ;;  %v3573_v32 = vld [vmem:[#allocation6_spill] sm:$0xff] }
 0x283   : > { %v895_v61 = vmax.f32 %v887_v52, 0.0  ;;  %v3198_v23 = vpop.f32.mrf.mxu0 }
 0x284   : > { %v931_v14 = vsub.f32 1.5, %v930_v49  ;;  %v1687_v22 = vmul.f32 %v3198_v23, %v3198_v23 }
 0x285   : > { %v2385_v55 = vpop.eup %2384  ;;  %v903_v63 = vadd.f32 1e-05, %v895_v61 }
 0x286   : > { %v938_v16 = vmul.f32 %v2385_v55, %v902_v33  ;;  %v834_v17 = vpop.f32.mrf.mxu1  ;;  %v932_v18 = vmul.f32 %v2383_v2, %v931_v14  ;;  %vm944_vm9 = vweird.f32 %v2385_v55  ;;  %1717 = vmatmul.f32.gmra.mxu1 %v1687_v22 }
 0x287   : > { %2386 = vrsqrt.f32 %v903_v63  ;;  %v848_v20 = vmul.f32 0.03125, %v834_v17  ;;  %vm945_vm11 = vmor %vm943_vm10, %vm944_vm9  ;;  %vm953_vm13 = vweird.f32 %v903_v63 }
 0x288   : > { %v936_v59 = vsel %vm935_vm8, %v2383_v2, %v932_v18  ;;  %v939_v25 = vmul.f32 %v2385_v55, %v938_v16 }
 0x289   : > { %v888_v26 = vsub.f32 %v848_v20, %v870_v58  ;;  %1304 = vrot.lane.b32.xlu1 %v3572_v6, %s2493_s26  ;;  %1056 = vrot.lane.b32.xlu0 %v936_v59, %s2494_s10  ;;  %v874_v58 = vpop.permute.xlu1 %873 }
 0x28a   : > { %2211 = vmatmul.msk.f32.gmra.mxu2 %vm571_vm4, %v936_v59  ;;  %v940_v60 = vmul.f32 0.5, %v939_v25 }
 0x28b   : > { %v896_v30 = vmax.f32 %v888_v26, 0.0  ;;  %v3206_v49 = vpop.f32.mrf.mxu0 }
 0x28c   : > { %v941_v31 = vsub.f32 1.5, %v940_v60  ;;  %v1688_v33 = vmul.f32 %v3206_v49, %v3206_v49  ;;  %v3574_v60 = vld [vmem:[#allocation10_spill] sm:$0xff] }
 0x28d   : > { %v2387_v1 = vpop.eup %2386  ;;  %v904_v11 = vadd.f32 1e-05, %v896_v30 }
 0x28e   : > { %v948_v9 = vmul.f32 %v2387_v1, %v903_v63  ;;  %v837_v2 = vpop.f32.mrf.mxu1  ;;  %v942_v38 = vmul.f32 %v2385_v55, %v941_v31  ;;  %vm954_vm12 = vweird.f32 %v2387_v1  ;;  %1720 = vmatmul.f32.gmra.mxu1 %v1688_v33 }
 0x28f   : > { %2388 = vrsqrt.f32 %v904_v11  ;;  %v849_v12 = vmul.f32 0.03125, %v837_v2  ;;  %vm955_vm0 = vmor %vm953_vm13, %vm954_vm12  ;;  %vm963_vm15 = vweird.f32 %v904_v11 }
 0x290   : > { %v946_v40 = vsel %vm945_vm11, %v2385_v55, %v942_v38  ;;  %v949_v43 = vmul.f32 %v2387_v1, %v948_v9 }
 0x291   : > { %v889_v13 = vsub.f32 %v849_v12, %v872_v41  ;;  %1058 = vrot.lane.b32.xlu2 %v946_v40, %s2494_s10  ;;  %1306 = vrot.lane.b32.xlu0 %v3573_v32, %s2493_s26 }
 0x292   : > { %2212 = vmatmul.msk.f32.gmra.mxu2 %vm571_vm4, %v946_v40  ;;  %v950_v52 = vmul.f32 0.5, %v949_v43  ;;  %v1301_v43 = vpop.permute.xlu0 %1300 }
 0x293   : > { %v897_v61 = vmax.f32 %v889_v13, 0.0  ;;  %v3214_v22 = vpop.f32.mrf.mxu0 }
 0x294   : > { %v951_v36 = vsub.f32 1.5, %v950_v52  ;;  %v1689_v63 = vmul.f32 %v3214_v22, %v3214_v22 }
 0x295   : > { %v2389_v14 = vpop.eup %2388  ;;  %v905_v55 = vadd.f32 1e-05, %v897_v61 }
 0x296   : > { %v958_v16 = vmul.f32 %v2389_v14, %v904_v11  ;;  %v840_v17 = vpop.f32.mrf.mxu1  ;;  %v952_v18 = vmul.f32 %v2387_v1, %v951_v36  ;;  %vm964_vm14 = vweird.f32 %v2389_v14  ;;  %1723 = vmatmul.f32.gmra.mxu1 %v1689_v63 }
 0x297   : > { %2390 = vrsqrt.f32 %v905_v55  ;;  %v850_v20 = vmul.f32 0.03125, %v840_v17  ;;  %vm965_vm2 = vmor %vm963_vm15, %vm964_vm14  ;;  %vm973_vm5 = vweird.f32 %v905_v55 }
 0x298   : > { %v956_v59 = vsel %vm955_vm0, %v2387_v1, %v952_v18  ;;  %v959_v25 = vmul.f32 %v2389_v14, %v958_v16 }
 0x299   : > { %v890_v26 = vsub.f32 %v850_v20, %v874_v58  ;;  %1308 = vrot.lane.b32.xlu2 %v3574_v60, %s2493_s26  ;;  %1060 = vrot.lane.b32.xlu1 %v956_v59, %s2494_s10 }
 0x29a   : > { %2213 = vmatmul.msk.f32.gmra.mxu2 %vm571_vm4, %v956_v59  ;;  %v960_v30 = vmul.f32 0.5, %v959_v25 }
 0x29b   : > { %v898_v31 = vmax.f32 %v890_v26, 0.0  ;;  %v3222_v36 = vpop.f32.mrf.mxu0 }
 0x29c   : > { %v961_v9 = vsub.f32 1.5, %v960_v30  ;;  %v1690_v11 = vmul.f32 %v3222_v36, %v3222_v36 }
 0x29d   : > { %v2391_v2 = vpop.eup %2390  ;;  %v906_v1 = vadd.f32 1e-05, %v898_v31 }
 0x29e   : > { %v968_v38 = vmul.f32 %v2391_v2, %v905_v55  ;;  %v1268_v12 = vpop.f32.mrf.mxu1  ;;  %v962_v41 = vmul.f32 %v2389_v14, %v961_v9  ;;  %vm974_vm3 = vweird.f32 %v2391_v2  ;;  %1726 = vmatmul.f32.gmra.mxu1 %v1690_v11 }
 0x29f   : > { %2392 = vrsqrt.f32 %v906_v1  ;;  %v1292_v40 = vmul.f32 0.03125, %v1268_v12  ;;  %vm975_vm6 = vmor %vm973_vm5, %vm974_vm3  ;;  %vm983_vm8 = vweird.f32 %v906_v1 }
 0x2a0   : > { %v966_v13 = vsel %vm965_vm2, %v2389_v14, %v962_v41  ;;  %v969_v52 = vmul.f32 %v2391_v2, %v968_v38 }
 0x2a1   : > { %v1324_v61 = vsub.f32 %v1292_v40, %v1301_v43  ;;  %1310 = vrot.lane.b32.xlu2 %v2909_v50, %s2493_s26  ;;  %1062 = vrot.lane.b32.xlu0 %v966_v13, %s2494_s10 }
 0x2a2   : > { %2214 = vmatmul.msk.f32.gmra.mxu2 %vm571_vm4, %v966_v13  ;;  %v970_v33 = vmul.f32 0.5, %v969_v52 }
 0x2a3   : > { %v1332_v16 = vmax.f32 %v1324_v61, 0.0  ;;  %v3230_v30 = vpop.f32.mrf.mxu0 }
 0x2a4   : > { %v971_v17 = vsub.f32 1.5, %v970_v33  ;;  %v1691_v31 = vmul.f32 %v3230_v30, %v3230_v30 }
 0x2a5   : > { %v2393_v18 = vpop.eup %2392  ;;  %v1340_v14 = vadd.f32 1e-05, %v1332_v16 }
 0x2a6   : > { %v978_v20 = vmul.f32 %v2393_v18, %v906_v1  ;;  %v972_v58 = vmul.f32 %v2391_v2, %v971_v17  ;;  %vm984_vm7 = vweird.f32 %v2393_v18  ;;  %1729 = vmatmul.f32.gmra.mxu1 %v1691_v31  ;;  %v3575_v1 = vld [vmem:[#allocation7_spill] sm:$0xff]  ;;  %v1271_v52 = vpop.f32.mrf.mxu1 }
 0x2a7   : > { %2394 = vrsqrt.f32 %v1340_v14  ;;  %vm985_vm9 = vmor %vm983_vm8, %vm984_vm7  ;;  %vm1354_vm11 = vweird.f32 %v1340_v14  ;;  %v1293_v17 = vmul.f32 0.03125, %v1271_v52 }
 0x2a8   : > { %v976_v59 = vsel %vm975_vm6, %v2391_v2, %v972_v58  ;;  %v979_v25 = vmul.f32 %v2393_v18, %v978_v20 }
 0x2a9   : > { %1312 = vrot.lane.b32.xlu2 %v2887_v4, %s2493_s26  ;;  %1064 = vrot.lane.b32.xlu0 %v976_v59, %s2494_s10 }
 0x2aa   : > { %2215 = vmatmul.msk.f32.gmra.mxu2 %vm571_vm4, %v976_v59  ;;  %v980_v26 = vmul.f32 0.5, %v979_v25 }
 0x2ac   : > { %v981_v63 = vsub.f32 1.5, %v980_v26 }
 0x2ad   : > { %v2395_v55 = vpop.eup %2394 }
 0x2ae   : > { %v1349_v9 = vmul.f32 %v2395_v55, %v1340_v14  ;;  %v982_v2 = vmul.f32 %v2393_v18, %v981_v63  ;;  %vm1355_vm10 = vweird.f32 %v2395_v55  ;;  %v1274_v61 = vpop.f32.mrf.mxu1 }
 0x2af   : > { %vm1356_vm12 = vmor %vm1354_vm11, %vm1355_vm10 }
 0x2b0   : > { %v986_v38 = vsel %vm985_vm9, %v2393_v18, %v982_v2  ;;  %v1350_v12 = vmul.f32 %v2395_v55, %v1349_v9 }
 0x2b1   : > { %1314 = vrot.lane.b32.xlu2 %v2834_v51, %s2493_s26  ;;  %1066 = vrot.lane.b32.xlu0 %v986_v38, %s2494_s10  ;;  %s2096_s10 = sshll.u32 %s2093_s28, 4  ;;  %s2097_s10 = int_to_ptr.hbm [resolvable:$true] %s2096_s10 }
 0x2b2   : > { %2216 = vmatmul.msk.f32.gmra.mxu2 %vm571_vm4, %v986_v38  ;;  %v1351_v41 = vmul.f32 0.5, %v1350_v12  ;;  %v1294_v12 = vmul.f32 0.03125, %v1274_v61 }
 0x2b4   : > { %v1352_v40 = vsub.f32 1.5, %v1351_v41 }
 0x2b6   : > { %v1353_v43 = vmul.f32 %v2395_v55, %v1352_v40  ;;  %v1277_v11 = vpop.f32.mrf.mxu1 }
 0x2b8   : > { %v1357_v13 = vsel %vm1356_vm12, %v2395_v55, %v1353_v43 }
 0x2b9   : > { %1741 = vrot.lane.b32.xlu2 %v3575_v1, %s2495_s11  ;;  %1493 = vrot.lane.b32.xlu0 %v1357_v13, %s2496_s12 }
 0x2ba   : > { %2243 = vmatmul.msk.f32.vlgmr.msra.gmra.mxu2 %vm571_vm4, %v1357_v13 }
 0x2be   : > { %v1280_v20 = vpop.f32.mrf.mxu1 }
 0x2c1   : > { %1743 = vrot.lane.b32.xlu2 %v3571_v62, %s2495_s11 }
 0x2c9   : > { %1745 = vrot.lane.b32.xlu2 %v3572_v6, %s2495_s11 }
 0x2d1   : > { %1747 = vrot.lane.b32.xlu2 %v3573_v32, %s2495_s11  ;;  %v1283_v32 = vpop.f32.mrf.mxu1 }
 0x2d3   : > { %v1053_v33 = vpop.permute.xlu2 %1052 }
 0x2d4   : > { %v1076_v16 = vmul.f32 %v1053_v33, %v2824_v47 }
 0x2d6   : > { %1092 = vrot.lane.b32.xlu1 %v1076_v16, %s2492_s18 }
 0x2d9   : > { %1749 = vrot.lane.b32.xlu2 %v3574_v60, %s2495_s11  ;;  %v1286_v55 = vpop.f32.mrf.mxu1 }
 0x2db   : > { %v1303_v18 = vpop.permute.xlu2 %1302 }
 0x2dc   : > { %v1325_v14 = vsub.f32 %v1293_v17, %v1303_v18  ;;  %v1297_v17 = vmul.f32 0.03125, %v1283_v32 }
 0x2de   : > { %v1333_v62 = vmax.f32 %v1325_v14, 0.0  ;;  %v1295_v14 = vmul.f32 0.03125, %v1277_v11 }
 0x2e0   : > { %v1341_v58 = vadd.f32 1e-05, %v1333_v62 }
 0x2e1   : > { %1751 = vrot.lane.b32.xlu2 %v2909_v50, %s2495_s11  ;;  %v1289_v1 = vpop.f32.mrf.mxu1 }
 0x2e2   : > { %2396 = vrsqrt.f32 %v1341_v58  ;;  %vm1364_vm0 = vweird.f32 %v1341_v58 }
 0x2e8   : > { %v2397_v6 = vpop.eup %2396 }
 0x2e9   : > { %v1359_v59 = vmul.f32 %v2397_v6, %v1341_v58  ;;  %1753 = vrot.lane.b32.xlu2 %v2887_v4, %s2495_s11  ;;  %vm1365_vm13 = vweird.f32 %v2397_v6  ;;  %v1296_v4 = vmul.f32 0.03125, %v1280_v20 }
 0x2ea   : > { %vm1366_vm14 = vmor %vm1364_vm0, %vm1365_vm13 }
 0x2eb   : > { %v1360_v25 = vmul.f32 %v2397_v6, %v1359_v59  ;;  %v1059_v26 = vpop.permute.xlu2 %1058 }
 0x2ed   : > { %v1361_v31 = vmul.f32 0.5, %v1360_v25  ;;  %v1709_v25 = vpop.f32.mrf.mxu1 }
 0x2ef   : > { %v1362_v63 = vsub.f32 1.5, %v1361_v31 }
 0x2f1   : > { %1755 = vrot.lane.b32.xlu2 %v2834_v51, %s2495_s11  ;;  %v1363_v60 = vmul.f32 %v2397_v6, %v1362_v63  ;;  %v1298_v63 = vmul.f32 0.03125, %v1286_v55 }
 0x2f3   : > { %v1055_v50 = vpop.permute.xlu1 %1054  ;;  %v1309_v9 = vpop.permute.xlu2 %1308  ;;  %v1367_v2 = vsel %vm1366_vm14, %v2397_v6, %v1363_v60  ;;  %v1079_v6 = vmul.f32 %v1059_v26, %v2814_v44 }
 0x2f4   : > { %v1077_v38 = vmul.f32 %v1055_v50, %v2849_v54  ;;  %1495 = vrot.lane.b32.xlu0 %v1367_v2, %s2496_s12  ;;  %2244 = vmatmul.msk.f32.gmra.mxu2 %vm571_vm4, %v1367_v2  ;;  %v1328_v41 = vsub.f32 %v1296_v4, %v1309_v9 }
 0x2f6   : > { %1094 = vrot.lane.b32.xlu1 %v1077_v38, %s2492_s18  ;;  %v1336_v52 = vmax.f32 %v1328_v41, 0.0 }
 0x2f8   : > { %v3264_v62 = vadd.f32 1e-05, %v1336_v52  ;;  %v1712_v52 = vpop.f32.mrf.mxu1 }
 0x2fa   : > { %vm1394_vm9 = vweird.f32 %v3264_v62 }
 0x2fb   : > { %v1305_v40 = vpop.permute.xlu1 %1304  ;;  %v1311_v51 = vpop.permute.xlu2 %1310 }
 0x2fc   : > { %v1326_v43 = vsub.f32 %v1294_v12, %v1305_v40  ;;  %v1057_v13 = vpop.permute.xlu0 %1056  ;;  %v1329_v20 = vsub.f32 %v1297_v17, %v1311_v51  ;;  %v1299_v51 = vmul.f32 0.03125, %v1289_v1 }
 0x2fd   : > { %v1078_v33 = vmul.f32 %v1057_v13, %v2802_v39 }
 0x2fe   : > { %v1334_v16 = vmax.f32 %v1326_v43, 0.0  ;;  %v1337_v31 = vmax.f32 %v1329_v20, 0.0 }
 0x2ff   : > { %1096 = vrot.lane.b32.xlu1 %v1078_v33, %s2492_s18 }
 0x300   : > { %v1342_v18 = vadd.f32 1e-05, %v1334_v16  ;;  %v3271_v38 = vadd.f32 1e-05, %v1337_v31 }
 0x302   : > { %2398 = vrsqrt.f32 %v1342_v18  ;;  %vm1374_vm2 = vweird.f32 %v1342_v18  ;;  %vm1404_vm12 = vweird.f32 %v3271_v38 }
 0x303   : > { %v1313_v61 = vpop.permute.xlu2 %1312  ;;  %2400 = vrsqrt.f32 %v3264_v62 }
 0x304   : > { %v1307_v58 = vpop.permute.xlu0 %1306  ;;  %v1330_v4 = vsub.f32 %v1298_v63, %v1313_v61 }
 0x305   : > { %v1327_v59 = vsub.f32 %v1295_v14, %v1307_v58 }
 0x306   : > { %v1338_v43 = vmax.f32 %v1330_v4, 0.0  ;;  %v1734_v4 = vmul.f32 0.03125, %v1712_v52 }
 0x307   : > { %v1335_v60 = vmax.f32 %v1327_v59, 0.0  ;;  %1098 = vrot.lane.b32.xlu1 %v1079_v6, %s2492_s18 }
 0x308   : > { %v2399_v32 = vpop.eup %2398  ;;  %v3279_v20 = vadd.f32 1e-05, %v1338_v43 }
 0x309   : > { %v1369_v50 = vmul.f32 %v2399_v32, %v1342_v18  ;;  %v1343_v11 = vadd.f32 1e-05, %v1335_v60  ;;  %v3269_v9 = vpop.eup %2400  ;;  %vm1375_vm15 = vweird.f32 %v2399_v32 }
 0x30a   : > { %v1389_v55 = vmul.f32 %v3269_v9, %v3264_v62  ;;  %vm1376_vm3 = vmor %vm1374_vm2, %vm1375_vm15  ;;  %vm1395_vm8 = vweird.f32 %v3269_v9 }
 0x30b   : > { %v1370_v2 = vmul.f32 %v2399_v32, %v1369_v50  ;;  %2402 = vrsqrt.f32 %v1343_v11  ;;  %v1061_v26 = vpop.permute.xlu1 %1060  ;;  %v1315_v12 = vpop.permute.xlu2 %1314  ;;  %vm1384_vm6 = vweird.f32 %v1343_v11  ;;  %vm1396_vm10 = vmor %vm1394_vm9, %vm1395_vm8 }
 0x30c   : > { %v1080_v41 = vmul.f32 %v1061_v26, %v2893_v7  ;;  %2404 = vrsqrt.f32 %v3271_v38  ;;  %v1390_v14 = vmul.f32 %v3269_v9, %v1389_v55  ;;  %v1331_v61 = vsub.f32 %v1299_v51, %v1315_v12 }
 0x30d   : > { %v1371_v40 = vmul.f32 0.5, %v1370_v2  ;;  %2406 = vrsqrt.f32 %v3279_v20  ;;  %v1733_v2 = vmul.f32 0.03125, %v1709_v25 }
 0x30e   : > { %v1391_v60 = vmul.f32 0.5, %v1390_v14  ;;  %v1339_v50 = vmax.f32 %v1331_v61, 0.0 }
 0x30f   : > { %1100 = vrot.lane.b32.xlu1 %v1080_v41, %s2492_s18  ;;  %v1372_v13 = vsub.f32 1.5, %v1371_v40  ;;  %v1715_v41 = vpop.f32.mrf.mxu1 }
 0x310   : > { %v3290_v40 = vadd.f32 1e-05, %v1339_v50  ;;  %v1735_v62 = vmul.f32 0.03125, %v1715_v41 }
 0x311   : > { %v2403_v33 = vpop.eup %2402  ;;  %v1373_v16 = vmul.f32 %v2399_v32, %v1372_v13  ;;  %v1392_v13 = vsub.f32 1.5, %v1391_v60 }
 0x312   : > { %v1379_v17 = vmul.f32 %v2403_v33, %v1343_v11  ;;  %v3284_v63 = vpop.eup %2404  ;;  %vm1385_vm5 = vweird.f32 %v2403_v33  ;;  %2408 = vrsqrt.f32 %v3290_v40 }
 0x313   : > { %v1742_v58 = vpop.permute.xlu2 %1741  ;;  %v1063_v1 = vpop.permute.xlu0 %1062  ;;  %v1377_v6 = vsel %vm1376_vm3, %v2399_v32, %v1373_v16  ;;  %v1399_v32 = vmul.f32 %v3284_v63, %v3271_v38  ;;  %vm1386_vm7 = vmor %vm1384_vm6, %vm1385_vm5  ;;  %vm1405_vm11 = vweird.f32 %v3284_v63  ;;  %vm1414_vm3 = vweird.f32 %v3279_v20 }
 0x314   : > { %v1380_v59 = vmul.f32 %v2403_v33, %v1379_v17  ;;  %v1081_v31 = vmul.f32 %v1063_v1, %v2902_v34  ;;  %1497 = vrot.lane.b32.xlu0 %v1377_v6, %s2496_s12  ;;  %2245 = vmatmul.msk.f32.gmra.mxu2 %vm571_vm4, %v1377_v6  ;;  %v1765_v55 = vsub.f32 %v1733_v2, %v1742_v58  ;;  %v3294_v61 = vpop.eup %2406  ;;  %vm1406_vm13 = vmor %vm1404_vm12, %vm1405_vm11 }
 0x315   : > { %v1400_v25 = vmul.f32 %v3284_v63, %v1399_v32  ;;  %v1409_v1 = vmul.f32 %v3294_v61, %v3279_v20  ;;  %vm1415_vm14 = vweird.f32 %v3294_v61 }
 0x316   : > { %v1381_v18 = vmul.f32 0.5, %v1380_v59  ;;  %v1773_v52 = vmax.f32 %v1765_v55, 0.0  ;;  %vm1416_vm5 = vmor %vm1414_vm3, %vm1415_vm14 }
 0x317   : > { %1102 = vrot.lane.b32.xlu1 %v1081_v31, %s2492_s18  ;;  %v1401_v58 = vmul.f32 0.5, %v1400_v25  ;;  %v1410_v60 = vmul.f32 %v3294_v61, %v1409_v1  ;;  %v1718_v32 = vpop.f32.mrf.mxu1 }
 0x318   : > { %v1382_v26 = vsub.f32 1.5, %v1381_v18  ;;  %v3305_v59 = vadd.f32 1e-05, %v1773_v52 }
 0x319   : > { %v1411_v55 = vmul.f32 0.5, %v1410_v60 }
 0x31a   : > { %v1383_v12 = vmul.f32 %v2403_v33, %v1382_v26  ;;  %v3310_v26 = vpop.eup %2408 }
 0x31b   : > { %v1744_v51 = vpop.permute.xlu2 %1743  ;;  %v1065_v43 = vpop.permute.xlu0 %1064  ;;  %v1412_v52 = vsub.f32 1.5, %v1411_v55  ;;  %vm1425_vm6 = vweird.f32 %v3310_v26 }
 0x31c   : > { %v1766_v16 = vsub.f32 %v1734_v4, %v1744_v51  ;;  %v1082_v17 = vmul.f32 %v1065_v43, %v2883_v3  ;;  %v1387_v14 = vsel %vm1386_vm7, %v2403_v33, %v1383_v12  ;;  %v1393_v33 = vmul.f32 %v3269_v9, %v1392_v13 }
 0x31d   : > { %1499 = vrot.lane.b32.xlu0 %v1387_v14, %s2496_s12  ;;  %2246 = vmatmul.msk.f32.gmra.mxu2 %vm571_vm4, %v1387_v14  ;;  %v1402_v4 = vsub.f32 1.5, %v1401_v58  ;;  %v1419_v51 = vmul.f32 %v3310_v26, %v3290_v40  ;;  %vm1424_vm7 = vweird.f32 %v3290_v40 }
 0x31e   : > { %v1774_v11 = vmax.f32 %v1766_v16, 0.0  ;;  %v1397_v2 = vsel %vm1396_vm10, %v3269_v9, %v1393_v33  ;;  %vm1426_vm8 = vmor %vm1424_vm7, %vm1425_vm6  ;;  %vm1795_vm10 = vweird.f32 %v3305_v59 }
 0x31f   : > { %1104 = vrot.lane.b32.xlu1 %v1082_v17, %s2492_s18  ;;  %v1403_v9 = vmul.f32 %v3284_v63, %v1402_v4  ;;  %v1420_v41 = vmul.f32 %v3310_v26, %v1419_v51  ;;  %v1721_v33 = vpop.f32.mrf.mxu1 }
 0x320   : > { %v1782_v6 = vadd.f32 1e-05, %v1774_v11 }
 0x321   : > { %v1407_v11 = vsel %vm1406_vm13, %v3284_v63, %v1403_v9  ;;  %v1421_v60 = vmul.f32 0.5, %v1420_v41 }
 0x322   : > { %2410 = vrsqrt.f32 %v1782_v6  ;;  %vm1805_vm15 = vweird.f32 %v1782_v6 }
 0x323   : > { %v1746_v31 = vpop.permute.xlu2 %1745  ;;  %v1067_v18 = vpop.permute.xlu0 %1066  ;;  %2412 = vrsqrt.f32 %v3305_v59 }
 0x324   : > { %v1083_v50 = vmul.f32 %v1067_v18, %v2826_v48  ;;  %v1767_v25 = vsub.f32 %v1735_v62, %v1746_v31  ;;  %v1736_v18 = vmul.f32 0.03125, %v1718_v32 }
 0x325   : > { %1501 = vrot.lane.b32.xlu0 %v1397_v2, %s2496_s12  ;;  %2247 = vmatmul.msk.f32.gmra.mxu2 %vm571_vm4, %v1397_v2  ;;  %v1413_v2 = vmul.f32 %v3294_v61, %v1412_v52 }
 0x326   : > { %v1775_v38 = vmax.f32 %v1767_v25, 0.0 }
 0x327   : > { %1106 = vrot.lane.b32.xlu1 %v1083_v50, %s2492_s18  ;;  %s2497_s18 = smov 12   ;;  %v1417_v9 = vsel %vm1416_vm5, %v3294_v61, %v1413_v2  ;;  %v1724_v25 = vpop.f32.mrf.mxu1 }
 0x328   : > { %v2411_v12 = vpop.eup %2410  ;;  %v3331_v4 = vadd.f32 1e-05, %v1775_v38 }
 0x329   : > { %v1800_v43 = vmul.f32 %v2411_v12, %v1782_v6  ;;  %v2413_v58 = vpop.eup %2412  ;;  %vm1806_vm0 = vweird.f32 %v2411_v12  ;;  %v1737_v6 = vmul.f32 0.03125, %v1721_v33 }
 0x32a   : > { %v1790_v50 = vmul.f32 %v2413_v58, %v3305_v59  ;;  %vm1807_vm2 = vmor %vm1805_vm15, %vm1806_vm0  ;;  %2414 = vrsqrt.f32 %v3331_v4  ;;  %vm1796_vm9 = vweird.f32 %v2413_v58  ;;  %v2426_v59 = vld [vmem:[%s3549_s4] sm:$0xf]  ;;  %vm1815_vm13 = vweird.f32 %v3331_v4 }
 0x32b   : > { %v1801_v13 = vmul.f32 %v2411_v12, %v1800_v43  ;;  %v1748_v16 = vpop.permute.xlu2 %1747  ;;  %v1494_v17 = vpop.permute.xlu0 %1493  ;;  %v1422_v43 = vsub.f32 1.5, %v1421_v60  ;;  %vm1797_vm11 = vmor %vm1795_vm10, %vm1796_vm9 }
 0x32c   : > { %v1517_v14 = vmul.f32 %v1494_v17, %v2824_v47  ;;  %v1768_v62 = vsub.f32 %v1736_v18, %v1748_v16  ;;  %v1791_v51 = vmul.f32 %v2413_v58, %v1790_v50 }
 0x32d   : > { %v1802_v1 = vmul.f32 0.5, %v1801_v13  ;;  %1503 = vrot.lane.b32.xlu0 %v1407_v11, %s2496_s12  ;;  %2248 = vmatmul.msk.f32.gmra.mxu2 %vm571_vm4, %v1407_v11 }
 0x32e   : > { %v1776_v20 = vmax.f32 %v1768_v62, 0.0  ;;  %v1792_v13 = vmul.f32 0.5, %v1791_v51 }
 0x32f   : > { %1533 = vrot.lane.b32.xlu1 %v1517_v14, %s2493_s26  ;;  %v1803_v31 = vsub.f32 1.5, %v1802_v1  ;;  %v1738_v1 = vmul.f32 0.03125, %v1724_v25  ;;  %v1727_v38 = vpop.f32.mrf.mxu1 }
 0x330   : > { %v3341_v16 = vadd.f32 1e-05, %v1776_v20  ;;  %v1793_v14 = vsub.f32 1.5, %v1792_v13  ;;  %v2415_v11 = vpop.eup %2414  ;;  %v1739_v62 = vmul.f32 0.03125, %v1727_v38 }
 0x331   : > { %v1804_v63 = vmul.f32 %v2411_v12, %v1803_v31  ;;  %v1810_v33 = vmul.f32 %v2415_v11, %v3331_v4  ;;  %vm1816_vm12 = vweird.f32 %v2415_v11 }
 0x332   : > { %2416 = vrsqrt.f32 %v3341_v16  ;;  %v1794_v40 = vmul.f32 %v2413_v58, %v1793_v14  ;;  %vm1825_vm14 = vweird.f32 %v3341_v16 }
 0x333   : > { %v1750_v32 = vpop.permute.xlu2 %1749  ;;  %v1808_v55 = vsel %vm1807_vm2, %v2411_v12, %v1804_v63  ;;  %v1423_v12 = vmul.f32 %v3310_v26, %v1422_v43 }
 0x334   : > { %1936 = vrot.lane.b32.xlu2 %v1808_v55, %s2497_s18  ;;  %v1769_v61 = vsub.f32 %v1737_v6, %v1750_v32  ;;  %v1798_v60 = vsel %vm1797_vm11, %v2413_v58, %v1794_v40 }
 0x335   : > { %1505 = vrot.lane.b32.xlu0 %v1417_v9, %s2496_s12  ;;  %2249 = vmatmul.msk.f32.gmra.mxu2 %vm571_vm4, %v1417_v9  ;;  %v1427_v41 = vsel %vm1426_vm8, %v3310_v26, %v1423_v12  ;;  %v1811_v26 = vmul.f32 %v2415_v11, %v1810_v33 }
 0x336   : > { %v1777_v52 = vmax.f32 %v1769_v61, 0.0 }
 0x337   : > { %v1812_v32 = vmul.f32 0.5, %v1811_v26  ;;  %v1730_v13 = vpop.f32.mrf.mxu1 }
 0x338   : > { %v1785_v18 = vadd.f32 1e-05, %v1777_v52  ;;  %v2417_v50 = vpop.eup %2416  ;;  %v1740_v61 = vmul.f32 0.03125, %v1730_v13 }
 0x339   : > { %v1820_v51 = vmul.f32 %v2417_v50, %v3341_v16  ;;  %v1813_v20 = vsub.f32 1.5, %v1812_v32  ;;  %vm1826_vm0 = vweird.f32 %v2417_v50 }
 0x33a   : > { %2418 = vrsqrt.f32 %v1785_v18  ;;  %vm1827_vm15 = vmor %vm1825_vm14, %vm1826_vm0  ;;  %vm1835_vm3 = vweird.f32 %v1785_v18 }
 0x33b   : > { %v1752_v17 = vpop.permute.xlu2 %1751  ;;  %v1821_v6 = vmul.f32 %v2417_v50, %v1820_v51  ;;  %v1814_v52 = vmul.f32 %v2415_v11, %v1813_v20 }
 0x33c   : > { %v1770_v31 = vsub.f32 %v1738_v1, %v1752_v17 }
 0x33d   : > { %1507 = vrot.lane.b32.xlu0 %v1427_v41, %s2496_s12  ;;  %2250 = vmatmul.msk.f32.gmra.mxu2 %vm571_vm4, %v1427_v41  ;;  %v1822_v17 = vmul.f32 0.5, %v1821_v6 }
 0x33e   : > { %v1778_v63 = vmax.f32 %v1770_v31, 0.0 }
 0x33f   : > { %v1823_v40 = vsub.f32 1.5, %v1822_v17 }
 0x340   : > { %v1786_v58 = vadd.f32 1e-05, %v1778_v63  ;;  %v2419_v25 = vpop.eup %2418 }
 0x341   : > { %v1830_v41 = vmul.f32 %v2419_v25, %v1785_v18  ;;  %v1824_v63 = vmul.f32 %v2417_v50, %v1823_v40  ;;  %vm1836_vm2 = vweird.f32 %v2419_v25 }
 0x342   : > { %2420 = vrsqrt.f32 %v1786_v58  ;;  %vm1837_vm5 = vmor %vm1835_vm3, %vm1836_vm2  ;;  %vm1845_vm7 = vweird.f32 %v1786_v58 }
 0x343   : > { %v1754_v2 = vpop.permute.xlu2 %1753  ;;  %v1831_v38 = vmul.f32 %v2419_v25, %v1830_v41  ;;  %v3364_v51 = vsel %vm1827_vm15, %v2417_v50, %v1824_v63 }
 0x344   : > { %v1771_v43 = vsub.f32 %v1739_v62, %v1754_v2 }
 0x345   : > { %1934 = vrot.lane.b32.xlu0 %v1798_v60, %s2497_s18  ;;  %2277 = vmatmul.msk.f32.vlgmr.msrb.gmra.mxu2 %vm571_vm4, %v1798_v60  ;;  %v1832_v60 = vmul.f32 0.5, %v1831_v38 }
 0x346   : > { %v1779_v12 = vmax.f32 %v1771_v43, 0.0 }
 0x347   : > { %v1833_v62 = vsub.f32 1.5, %v1832_v60 }
 0x348   : > { %v1093_v9 = vpop.permute.xlu1 %1092  ;;  %v1787_v1 = vadd.f32 1e-05, %v1779_v12  ;;  %v2421_v26 = vpop.eup %2420 }
 0x349   : > { %2218 = vmatmul.msk.f32.vlgmr.msra.gmra.mxu3 %vm571_vm4, %v1093_v9  ;;  %v1840_v2 = vmul.f32 %v2421_v26, %v1786_v58  ;;  %v1834_v43 = vmul.f32 %v2419_v25, %v1833_v62  ;;  %vm1846_vm6 = vweird.f32 %v2421_v26 }
 0x34a   : > { %2285 = vmatpush.msk.msra.mxu3 %vm596_vm1, %v2426_v59  ;;  %vm1817_vm1 = vmor %vm1815_vm13, %vm1816_vm12  ;;  %2422 = vrsqrt.f32 %v1787_v1  ;;  %vm1855_vm10 = vweird.f32 %v1787_v1 }
 0x34b   : > { %v1756_v14 = vpop.permute.xlu2 %1755  ;;  %v3359_v31 = vsel %vm1817_vm1, %v2415_v11, %v1814_v52  ;;  %v1841_v32 = vmul.f32 %v2421_v26, %v1840_v2  ;;  %v1838_v16 = vsel %vm1837_vm5, %v2419_v25, %v1834_v43  ;;  %vm1847_vm8 = vmor %vm1845_vm7, %vm1846_vm6 }
 0x34c   : > { %v1772_v33 = vsub.f32 %v1740_v61, %v1756_v14 }
 0x34d   : > { %2278 = vmatmul.msk.f32.gmra.mxu2 %vm571_vm4, %v1808_v55  ;;  %v1842_v9 = vmul.f32 0.5, %v1841_v32 }
 0x34e   : > { %v1780_v55 = vmax.f32 %v1772_v33, 0.0 }
 0x34f   : > { %v1843_v20 = vsub.f32 1.5, %v1842_v9 }
 0x350   : > { %v1788_v4 = vadd.f32 1e-05, %v1780_v55  ;;  %v2423_v11 = vpop.eup %2422 }
 0x351   : > { %v1850_v59 = vmul.f32 %v2423_v11, %v1787_v1  ;;  %v1844_v14 = vmul.f32 %v2421_v26, %v1843_v20  ;;  %vm1856_vm9 = vweird.f32 %v2423_v11 }
 0x352   : > { %2424 = vrsqrt.f32 %v1788_v4  ;;  %vm1857_vm11 = vmor %vm1855_vm10, %vm1856_vm9  ;;  %vm1865_vm13 = vweird.f32 %v1788_v4 }
 0x353   : > { %v1851_v6 = vmul.f32 %v2423_v11, %v1850_v59  ;;  %v1848_v25 = vsel %vm1847_vm8, %v2421_v26, %v1844_v14 }
 0x355   : > { %2279 = vmatmul.msk.f32.gmra.mxu2 %vm571_vm4, %v3359_v31  ;;  %v1852_v61 = vmul.f32 0.5, %v1851_v6 }
 0x357   : > { %v1853_v18 = vsub.f32 1.5, %v1852_v61 }
 0x358   : > { %v2425_v13 = vpop.eup %2424 }
 0x359   : > { %v1860_v17 = vmul.f32 %v2425_v13, %v1788_v4  ;;  %v1854_v40 = vmul.f32 %v2423_v11, %v1853_v18  ;;  %vm1866_vm12 = vweird.f32 %v2425_v13 }
 0x35a   : > { %vm1867_vm1 = vmor %vm1865_vm13, %vm1866_vm12 }
 0x35b   : > { %v1861_v52 = vmul.f32 %v2425_v13, %v1860_v17  ;;  %v1858_v60 = vsel %vm1857_vm11, %v2423_v11, %v1854_v40 }
 0x35d   : > { %2280 = vmatmul.msk.f32.gmra.mxu2 %vm571_vm4, %v3364_v51  ;;  %v1862_v33 = vmul.f32 0.5, %v1861_v52 }
 0x35f   : > { %v1863_v55 = vsub.f32 1.5, %v1862_v33 }
 0x361   : > { %v1864_v2 = vmul.f32 %v2425_v13, %v1863_v55 }
 0x363   : > { %v1868_v26 = vsel %vm1867_vm1, %v2425_v13, %v1864_v2 }
 0x365   : > { %2281 = vmatmul.msk.f32.gmra.mxu2 %vm571_vm4, %v1838_v16 }
 0x366   : > { %v1496_v12 = vpop.permute.xlu0 %1495 }
 0x367   : > { %v1518_v50 = vmul.f32 %v1496_v12, %v2849_v54 }
 0x368   : > { %v1095_v41 = vpop.permute.xlu1 %1094 }
 0x369   : > { %1535 = vrot.lane.b32.xlu1 %v1518_v50, %s2493_s26  ;;  %2219 = vmatmul.msk.f32.gmra.mxu3 %vm571_vm4, %v1095_v41 }
 0x36d   : > { %2282 = vmatmul.msk.f32.gmra.mxu2 %vm571_vm4, %v1848_v25 }
 0x371   : > { %v1097_v38 = vpop.permute.xlu1 %1096 }
 0x372   : > { %2220 = vmatmul.msk.f32.gmra.mxu3 %vm571_vm4, %v1097_v38 }
 0x375   : > { %2283 = vmatmul.msk.f32.gmra.mxu2 %vm571_vm4, %v1858_v60 }
 0x379   : > { %v1099_v58 = vpop.permute.xlu1 %1098 }
 0x37a   : > { %2221 = vmatmul.msk.f32.gmra.mxu3 %vm571_vm4, %v1099_v58 }
 0x37d   : > { %2284 = vmatmul.msk.f32.gmra.mxu2 %vm571_vm4, %v1868_v26 }
 0x381   : > { %v1101_v63 = vpop.permute.xlu1 %1100 }
 0x382   : > { %2222 = vmatmul.msk.f32.gmra.mxu3 %vm571_vm4, %v1101_v63 }
 0x386   : > { %v1498_v1 = vpop.permute.xlu0 %1497 }
 0x387   : > { %v1519_v62 = vmul.f32 %v1498_v1, %v2802_v39 }
 0x389   : > { %v1103_v32 = vpop.permute.xlu1 %1102  ;;  %1537 = vrot.lane.b32.xlu1 %v1519_v62, %s2493_s26 }
 0x38a   : > { %2223 = vmatmul.msk.f32.gmra.mxu3 %vm571_vm4, %v1103_v32 }
 0x38f   : > { %v1500_v11 = vpop.permute.xlu0 %1499 }
 0x390   : > { %v1520_v4 = vmul.f32 %v1500_v11, %v2814_v44 }
 0x391   : > { %v1105_v9 = vpop.permute.xlu1 %1104 }
 0x392   : > { %1539 = vrot.lane.b32.xlu1 %v1520_v4, %s2493_s26  ;;  %2224 = vmatmul.msk.f32.gmra.mxu3 %vm571_vm4, %v1105_v9 }
 0x397   : > { %v1502_v59 = vpop.permute.xlu0 %1501 }
 0x398   : > { %v1521_v43 = vmul.f32 %v1502_v59, %v2893_v7 }
 0x399   : > { %v1107_v20 = vpop.permute.xlu1 %1106 }
 0x39a   : > { %1938 = vrot.lane.b32.xlu1 %v3359_v31, %s2497_s18  ;;  %1541 = vrot.lane.b32.xlu0 %v1521_v43, %s2493_s26 }
 0x39b   : > { %2225 = vmatmul.msk.f32.gmra.mxu3 %vm571_vm4, %v1107_v20 }
 0x39f   : > { %v1504_v6 = vpop.permute.xlu0 %1503 }
 0x3a0   : > { %v1522_v13 = vmul.f32 %v1504_v6, %v2902_v34 }
 0x3a1   : > { %v1534_v12 = vpop.permute.xlu1 %1533 }
 0x3a2   : > { %1940 = vrot.lane.b32.xlu0 %v3364_v51, %s2497_s18  ;;  %1543 = vrot.lane.b32.xlu2 %v1522_v13, %s2493_s26  ;;  %v1937_v51 = vpop.permute.xlu2 %1936 }
 0x3a3   : > { %2252 = vmatmul.msk.f32.vlgmr.msrb.gmra.mxu3 %vm571_vm4, %v1534_v12  ;;  %v1959_v14 = vmul.f32 %v1937_v51, %v2849_v54  ;;  %v3410_v54 = vld [vmem:[%s3550_s5] ss:$0 sm:$0xff] }
 0x3a7   : > { %v1506_v50 = vpop.permute.xlu0 %1505 }
 0x3a8   : > { %v1523_v61 = vmul.f32 %v1506_v50, %v2883_v3 }
 0x3aa   : > { %1942 = vrot.lane.b32.xlu2 %v1838_v16, %s2497_s18  ;;  %1545 = vrot.lane.b32.xlu1 %v1523_v61, %s2493_s26  ;;  %v1028_v16 = vpop.f32.mrf.mxu2 }
 0x3ab   : > { %v1165_v52 = vmul.f32 %v1028_v16, %v3027_v46 }
 0x3af   : > { %v1508_v31 = vpop.permute.xlu0 %1507 }
 0x3b0   : > { %v1524_v17 = vmul.f32 %v1508_v31, %v2826_v48 }
 0x3b2   : > { %1944 = vrot.lane.b32.xlu1 %v1848_v25, %s2497_s18  ;;  %1547 = vrot.lane.b32.xlu0 %v1524_v17, %s2493_s26  ;;  %v1031_v40 = vpop.f32.mrf.mxu2  ;;  %s2448_s26 = scalar_lea.hbm %s3551_s6, 512 }
 0x3b7   : > { %v1935_v41 = vpop.permute.xlu0 %1934 }
 0x3b8   : > { %v1958_v18 = vmul.f32 %v1935_v41, %v2824_v47 }
 0x3ba   : > { %1976 = vrot.lane.b32.xlu1 %v1959_v14, %s2495_s11  ;;  %1946 = vrot.lane.b32.xlu0 %v1858_v60, %s2497_s18  ;;  %v1034_v55 = vpop.f32.mrf.mxu2  ;;  %v1166_v60 = vmul.f32 %v1031_v40, %v3035_v45 }
 0x3bb   : > { %1974 = vrot.lane.b32.xlu2 %v1958_v18, %s2495_s11  ;;  %v1167_v63 = vmul.f32 %v1034_v55, %v3048_v15 }
 0x3c2   : > { %v1037_v58 = vpop.f32.mrf.mxu2 }
 0x3c3   : > { %1948 = vrot.lane.b32.xlu2 %v1868_v26, %s2497_s18  ;;  %v1168_v9 = vmul.f32 %v1037_v58, %v3069_v42 }
 0x3ca   : > { %v1040_v11 = vpop.f32.mrf.mxu2 }
 0x3cb   : > { %v1169_v15 = vmul.f32 %v1040_v11, %v3081_v5 }
 0x3cc   : > { %v1141_v25 = vpop.f32.mrf.mxu3 }
 0x3cd   : > { %v1173_v33 = vsub.f32 %v1165_v52, %v1141_v25 }
 0x3cf   : > { %v1181_v47 = vadd.f32 %v3410_v54, %v1173_v33 }
 0x3d1   : > { %2226 = vst [vmem:[%s3100_s9 + $0x8] sm:$0xff] %v1181_v47 }
 0x3d2   : > { %v1043_v6 = vpop.f32.mrf.mxu2 }
 0x3d3   : > { %v1170_v17 = vmul.f32 %v1043_v6, %v3096_v29 }
 0x3db   : > { %v1536_v38 = vpop.permute.xlu1 %1535 }
 0x3dc   : > { %2253 = vmatmul.msk.f32.gmra.mxu3 %vm571_vm4, %v1536_v38 }
 0x3ec   : > { %v1144_v2 = vpop.f32.mrf.mxu3 }
 0x3ed   : > { %v1174_v46 = vsub.f32 %v1166_v60, %v1144_v2 }
 0x3ef   : > { %v1182_v26 = vadd.f32 %v3410_v54, %v1174_v46 }
 0x3f1   : > { %2227 = vst [vmem:[%s3100_s9 + $0x28] sm:$0xff] %v1182_v26 }
 0x3f5   : > { %v1147_v1 = vpop.f32.mrf.mxu3 }
 0x3f6   : > { %v1175_v62 = vsub.f32 %v1167_v63, %v1147_v1 }
 0x3f8   : > { %v1183_v32 = vadd.f32 %v3410_v54, %v1175_v62 }
 0x3fa   : > { %2228 = vst [vmem:[%s3100_s9 + $0x48] sm:$0xff] %v1183_v32 }
 0x3fb   : > { %v1538_v4 = vpop.permute.xlu1 %1537 }
 0x3fc   : > { %v1544_v59 = vpop.permute.xlu2 %1543  ;;  %2254 = vmatmul.msk.f32.gmra.mxu3 %vm571_vm4, %v1538_v4 }
 0x3fd   : > { %v1150_v45 = vpop.f32.mrf.mxu3 }
 0x3fe   : > { %v1176_v43 = vsub.f32 %v1168_v9, %v1150_v45 }
 0x400   : > { %v1184_v20 = vadd.f32 %v3410_v54, %v1176_v43 }
 0x402   : > { %2229 = vst [vmem:[%s3100_s9 + $0x68] sm:$0xff] %v1184_v20 }
 0x404   : > { %v1540_v13 = vpop.permute.xlu1 %1539  ;;  %v1943_v12 = vpop.permute.xlu2 %1942 }
 0x405   : > { %v1962_v50 = vmul.f32 %v1943_v12, %v2893_v7  ;;  %v1153_v61 = vpop.f32.mrf.mxu3  ;;  %2255 = vmatmul.msk.f32.gmra.mxu3 %vm571_vm4, %v1540_v13  ;;  %v1046_v7 = vpop.f32.mrf.mxu2 }
 0x406   : > { %v1177_v42 = vsub.f32 %v1169_v15, %v1153_v61  ;;  %v1171_v52 = vmul.f32 %v1046_v7, %v3107_v0 }
 0x407   : > { %1982 = vrot.lane.b32.xlu2 %v1962_v50, %s2495_s11 }
 0x408   : > { %v1185_v31 = vadd.f32 %v3410_v54, %v1177_v42 }
 0x40a   : > { %2230 = vst [vmem:[%s3100_s9 + $0x88] sm:$0xff] %v1185_v31 }
 0x40c   : > { %v1939_v51 = vpop.permute.xlu1 %1938  ;;  %v1542_v41 = vpop.permute.xlu0 %1541 }
 0x40d   : > { %v1960_v5 = vmul.f32 %v1939_v51, %v2802_v39  ;;  %v1156_v14 = vpop.f32.mrf.mxu3  ;;  %2256 = vmatmul.msk.f32.gmra.mxu3 %vm571_vm4, %v1542_v41  ;;  %v1049_v40 = vpop.f32.mrf.mxu2 }
 0x40e   : > { %v1178_v18 = vsub.f32 %v1170_v17, %v1156_v14  ;;  %v1172_v60 = vmul.f32 %v1049_v40, %v3116_v53 }
 0x40f   : > { %1978 = vrot.lane.b32.xlu0 %v1960_v5, %s2495_s11 }
 0x410   : > { %v1186_v16 = vadd.f32 %v3410_v54, %v1178_v18 }
 0x412   : > { %2231 = vst [vmem:[%s3100_s9 + $0xa8] sm:$0xff] %v1186_v16 }
 0x414   : > { %v1941_v25 = vpop.permute.xlu0 %1940 }
 0x415   : > { %v1975_v33 = vpop.permute.xlu2 %1974  ;;  %v1961_v29 = vmul.f32 %v1941_v25, %v2814_v44  ;;  %v1159_v47 = vpop.f32.mrf.mxu3  ;;  %2257 = vmatmul.msk.f32.gmra.mxu3 %vm571_vm4, %v1544_v59 }
 0x416   : > { %v1179_v39 = vsub.f32 %v1171_v52, %v1159_v47  ;;  %v1469_v26 = vpop.f32.mrf.mxu2 }
 0x417   : > { %1980 = vrot.lane.b32.xlu1 %v1961_v29, %s2495_s11  ;;  %v1606_v62 = vmul.f32 %v1469_v26, %v3125_v57 }
 0x418   : > { %v1187_v38 = vadd.f32 %v3410_v54, %v1179_v39 }
 0x41a   : > { %2232 = vst [vmem:[%s3100_s9 + $0xc8] sm:$0xff] %v1187_v38 }
 0x41c   : > { %v1546_v55 = vpop.permute.xlu1 %1545 }
 0x41d   : > { %v1949_v2 = vpop.permute.xlu2 %1948  ;;  %2258 = vmatmul.msk.f32.gmra.mxu3 %vm571_vm4, %v1546_v55 }
 0x41e   : > { %v1965_v0 = vmul.f32 %v1949_v2, %v2826_v48  ;;  %v1162_v44 = vpop.f32.mrf.mxu3 }
 0x41f   : > { %v1180_v46 = vsub.f32 %v1172_v60, %v1162_v44 }
 0x420   : > { %1988 = vrot.lane.b32.xlu2 %v1965_v0, %s2495_s11 }
 0x421   : > { %v1188_v58 = vadd.f32 %v3410_v54, %v1180_v46 }
 0x423   : > { %2233 = vst [vmem:[%s3100_s9 + $0xe8] sm:$0xff] %v1188_v58 }
 0x424   : > { %v1945_v63 = vpop.permute.xlu1 %1944  ;;  %v1548_v1 = vpop.permute.xlu0 %1547 }
 0x425   : > { %v1963_v53 = vmul.f32 %v1945_v63, %v2902_v34  ;;  %2259 = vmatmul.msk.f32.gmra.mxu3 %vm571_vm4, %v1548_v1  ;;  %v1472_v34 = vpop.f32.mrf.mxu2 }
 0x426   : > { %v1582_v32 = vpop.f32.mrf.mxu3  ;;  %v1607_v59 = vmul.f32 %v1472_v34, %v3134_v19 }
 0x427   : > { %v1614_v48 = vsub.f32 %v1606_v62, %v1582_v32  ;;  %1984 = vrot.lane.b32.xlu0 %v1963_v53, %s2495_s11 }
 0x429   : > { %v1622_v11 = vadd.f32 %v3410_v54, %v1614_v48 }
 0x42b   : > { %2260 = vst [vmem:[%s3100_s9 + $0x10] sm:$0xff] %v1622_v11 }
 0x42c   : > { %v1947_v4 = vpop.permute.xlu0 %1946  ;;  %v1977_v57 = vpop.permute.xlu1 %1976 }
 0x42d   : > { %v1964_v9 = vmul.f32 %v1947_v4, %v2883_v3  ;;  %2286 = vmatmul.msk.f32.vlgmr.msra.gmra.mxu3 %vm571_vm4, %v1975_v33  ;;  %v1475_v6 = vpop.f32.mrf.mxu2 }
 0x42e   : > { %v1608_v3 = vmul.f32 %v1475_v6, %v3150_v27 }
 0x42f   : > { %1986 = vrot.lane.b32.xlu1 %v1964_v9, %s2495_s11  ;;  %s2442_s11 = sshra.s32 %s2097_s10, 4  ;;  %s2443_s11 = int_to_ptr.hbm [resolvable:$true] %s2442_s11 }
 0x430   : > { %s2444_s18 = scalar_lea.hbm %s2443_s11, 256  ;;  %p2449_p0 = scmp.lt.s32.totalorder %s2443_s11, %s3551_s6 }
 0x431   : > { %p2445_p11 = scmp.ne.s32.totalorder %s2443_s11, %s2444_s18  ;;  %p2450_p1 = scmp.lt.s32.totalorder %s2448_s26, %s2444_s18 }
 0x433   : > { %p2446_p12 = pnand %p2445_p11, %p2572_p5  ;;  %p2451_p2 = por %p2450_p1, %p2449_p0 }
 0x435   : > { %2287 = vmatmul.msk.f32.gmra.mxu3 %vm571_vm4, %v1977_v57  ;;  %v1478_v15 = vpop.f32.mrf.mxu2  ;;  %p2447_p13 = pneg %p2446_p12 }
 0x436   : > { %v1609_v19 = vmul.f32 %v1478_v15, %v3154_v28 }
 0x437   : > { %p2452_p3 = pnand %p2451_p2, %p2447_p13 }
 0x43d   : > { %v1481_v61 = vpop.f32.mrf.mxu2 }
 0x43e   : > { %v1610_v5 = vmul.f32 %v1481_v61, %v3158_v21 }
 0x445   : > { %v1484_v27 = vpop.f32.mrf.mxu2 }
 0x446   : > { %v1611_v52 = vmul.f32 %v1484_v27, %v3162_v10 }
 0x44d   : > { %v1487_v28 = vpop.f32.mrf.mxu2 }
 0x44e   : > { %v1612_v21 = vmul.f32 %v1487_v28, %v3166_v8 }
 0x455   : > { %v1490_v39 = vpop.f32.mrf.mxu2 }
 0x456   : > { %v1613_v60 = vmul.f32 %v1490_v39, %v3170_v56 }
 0x45d   : > { %v1910_v46 = vpop.f32.mrf.mxu2 }
 0x45e   : > { %v2047_v58 = vmul.f32 %v1910_v46, %v3174_v24 }
 0x45f   : > { %v1585_v45 = vpop.f32.mrf.mxu3 }
 0x460   : > { %v1615_v43 = vsub.f32 %v1607_v59, %v1585_v45 }
 0x461   : > { %v1983_v7 = vpop.permute.xlu2 %1982 }
 0x462   : > { %v1623_v20 = vadd.f32 %v3410_v54, %v1615_v43 }
 0x464   : > { %2261 = vst [vmem:[%s3100_s9 + $0x30] sm:$0xff] %v1623_v20 }
 0x465   : > { %v1913_v62 = vpop.f32.mrf.mxu2 }
 0x466   : > { %v2048_v56 = vmul.f32 %v1913_v62, %v3180_v35 }
 0x46d   : > { %v1916_v11 = vpop.f32.mrf.mxu2 }
 0x46e   : > { %v2049_v9 = vmul.f32 %v1916_v11, %v3190_v37 }
 0x475   : > { %v1919_v4 = vpop.f32.mrf.mxu2 }
 0x476   : > { %v2050_v45 = vmul.f32 %v1919_v4, %v3198_v23 }
 0x47a   : > { %v1989_v0 = vpop.permute.xlu2 %1988 }
 0x47d   : > { %v1922_v59 = vpop.f32.mrf.mxu2 }
 0x47e   : > { %v2051_v6 = vmul.f32 %v1922_v59, %v3206_v49 }
 0x47f   : > { %v1588_v13 = vpop.f32.mrf.mxu3 }
 0x480   : > { %v1616_v12 = vsub.f32 %v1608_v3, %v1588_v13 }
 0x481   : > { %v1979_v50 = vpop.permute.xlu0 %1978 }
 0x482   : > { %v1624_v42 = vadd.f32 %v3410_v54, %v1616_v12  ;;  %2288 = vmatmul.msk.f32.gmra.mxu3 %vm571_vm4, %v1979_v50 }
 0x484   : > { %2262 = vst [vmem:[%s3100_s9 + $0x50] sm:$0xff] %v1624_v42 }
 0x485   : > { %v1925_v15 = vpop.f32.mrf.mxu2 }
 0x486   : > { %v2052_v12 = vmul.f32 %v1925_v15, %v3214_v22 }
 0x488   : > { %v1591_v31 = vpop.f32.mrf.mxu3 }
 0x489   : > { %v1617_v17 = vsub.f32 %v1609_v19, %v1591_v31  ;;  %v1981_v51 = vpop.permute.xlu1 %1980 }
 0x48a   : > { %2289 = vmatmul.msk.f32.gmra.mxu3 %vm571_vm4, %v1981_v51 }
 0x48b   : > { %v1625_v41 = vadd.f32 %v3410_v54, %v1617_v17 }
 0x48d   : > { %2263 = vst [vmem:[%s3100_s9 + $0x70] sm:$0xff] %v1625_v41  ;;  %v1928_v61 = vpop.f32.mrf.mxu2 }
 0x48e   : > { %v2053_v19 = vmul.f32 %v1928_v61, %v3222_v36 }
 0x490   : > { %v1594_v14 = vpop.f32.mrf.mxu3 }
 0x491   : > { %v1618_v18 = vsub.f32 %v1610_v5, %v1594_v14 }
 0x492   : > { %2290 = vmatmul.msk.f32.gmra.mxu3 %vm571_vm4, %v1983_v7 }
 0x493   : > { %v1626_v16 = vadd.f32 %v3410_v54, %v1618_v18 }
 0x495   : > { %2264 = vst [vmem:[%s3100_s9 + $0x90] sm:$0xff] %v1626_v16  ;;  %v1931_v51 = vpop.f32.mrf.mxu2 }
 0x496   : > { %v2054_v22 = vmul.f32 %v1931_v51, %v3230_v30 }
 0x498   : > { %v1597_v25 = vpop.f32.mrf.mxu3 }
 0x499   : > { %v1619_v33 = vsub.f32 %v1611_v52, %v1597_v25  ;;  %v1985_v29 = vpop.permute.xlu0 %1984 }
 0x49a   : > { %2291 = vmatmul.msk.f32.gmra.mxu3 %vm571_vm4, %v1985_v29 }
 0x49b   : > { %v1627_v47 = vadd.f32 %v3410_v54, %v1619_v33 }
 0x49d   : > { %2265 = vst [vmem:[%s3100_s9 + $0xb0] sm:$0xff] %v1627_v47 }
 0x4a0   : > { %v1600_v40 = vpop.f32.mrf.mxu3 }
 0x4a1   : > { %v1620_v38 = vsub.f32 %v1612_v21, %v1600_v40  ;;  %v1987_v55 = vpop.permute.xlu1 %1986 }
 0x4a2   : > { %2292 = vmatmul.msk.f32.gmra.mxu3 %vm571_vm4, %v1987_v55 }
 0x4a3   : > { %v1628_v10 = vadd.f32 %v3410_v54, %v1620_v38 }
 0x4a5   : > { %2266 = vst [vmem:[%s3100_s9 + $0xd0] sm:$0xff] %v1628_v10 }
 0x4a8   : > { %v1603_v2 = vpop.f32.mrf.mxu3 }
 0x4a9   : > { %v1621_v44 = vsub.f32 %v1613_v60, %v1603_v2 }
 0x4aa   : > { %2293 = vmatmul.msk.f32.gmra.mxu3 %vm571_vm4, %v1989_v0 }
 0x4ab   : > { %v1629_v8 = vadd.f32 %v3410_v54, %v1621_v44 }
 0x4ad   : > { %2267 = vst [vmem:[%s3100_s9 + $0xf0] sm:$0xff] %v1629_v8 }
 0x4b0   : > { %v2023_v26 = vpop.f32.mrf.mxu3 }
 0x4b1   : > { %v2055_v63 = vsub.f32 %v2047_v58, %v2023_v26 }
 0x4b3   : > { %v2063_v1 = vadd.f32 %v3410_v54, %v2055_v63 }
 0x4b5   : > { %2294 = vst [vmem:[%s3100_s9 + $0x18] sm:$0xff] %v2063_v1 }
 0x4b8   : > { %v2026_v53 = vpop.f32.mrf.mxu3 }
 0x4b9   : > { %v2056_v32 = vsub.f32 %v2048_v56, %v2026_v53 }
 0x4bb   : > { %v2064_v48 = vadd.f32 %v3410_v54, %v2056_v32 }
 0x4bd   : > { %2295 = vst [vmem:[%s3100_s9 + $0x38] sm:$0xff] %v2064_v48 }
 0x505   : > { %v2029_v24 = vpop.f32.mrf.mxu3 }
 0x506   : > { %v2057_v57 = vsub.f32 %v2049_v9, %v2029_v24 }
 0x508   : > { %v2065_v34 = vadd.f32 %v3410_v54, %v2057_v57 }
 0x50a   : > { %2296 = vst [vmem:[%s3100_s9 + $0x58] sm:$0xff] %v2065_v34 }
 0x50d   : > { %v2032_v35 = vpop.f32.mrf.mxu3 }
 0x50e   : > { %v2058_v43 = vsub.f32 %v2050_v45, %v2032_v35 }
 0x510   : > { %v2066_v20 = vadd.f32 %v3410_v54, %v2058_v43 }
 0x512   : > { %2297 = vst [vmem:[%s3100_s9 + $0x78] sm:$0xff] %v2066_v20 }
 0x515   : > { %v2035_v37 = vpop.f32.mrf.mxu3 }
 0x516   : > { %v2059_v3 = vsub.f32 %v2051_v6, %v2035_v37 }
 0x518   : > { %v2067_v13 = vadd.f32 %v3410_v54, %v2059_v3 }
 0x51a   : > { %2298 = vst [vmem:[%s3100_s9 + $0x98] sm:$0xff] %v2067_v13 }
 0x51d   : > { %v2038_v23 = vpop.f32.mrf.mxu3 }
 0x51e   : > { %v2060_v50 = vsub.f32 %v2052_v12, %v2038_v23 }
 0x520   : > { %v2068_v42 = vadd.f32 %v3410_v54, %v2060_v50 }
 0x522   : > { %2299 = vst [vmem:[%s3100_s9 + $0xb8] sm:$0xff] %v2068_v42 }
 0x525   : > { %v2041_v49 = vpop.f32.mrf.mxu3 }
 0x526   : > { %v2061_v31 = vsub.f32 %v2053_v19, %v2041_v49 }
 0x528   : > { %v2069_v17 = vadd.f32 %v3410_v54, %v2061_v31 }
 0x52a   : > { %2300 = vst [vmem:[%s3100_s9 + $0xd8] sm:$0xff] %v2069_v17 }
 0x52d   : > { %v2044_v41 = vpop.f32.mrf.mxu3 }
 0x52e   : > { %v2062_v36 = vsub.f32 %v2054_v22, %v2044_v41 }
 0x530   : > { %v2070_v27 = vadd.f32 %v3410_v54, %v2062_v36 }
 0x532   : > { %2301 = vst [vmem:[%s3100_s9 + $0xf8] sm:$0xff] %v2070_v27 }
 0x533   : > { %2455 = shalt.err (!%p2452_p3)
}
 0x534   : > { %s2498_s19 = smov 128  }
 0x535   : > { %2315 = dma.vmem_to_hbm [thread:$0]  (%p2572_p5), %s2095_s29, 4096, %s2097_s10, %s2081_s25, %s2498_s19, %s2498_s19, %s2496_s12  }
 0x536 PF: > { %p2321_p4 = scmp.ge.s32.totalorder %s2490_s24, 2  ;;  %s2111_s9 = sand.u32 1, %s2478_s21  }
 0x537   : > { %s2112_s17 = scalar_lea.sflag [#allocation3], %s2111_s9 }
 0x538   : > { %p2318_p7 = pnand %p2321_p4, %p2576_p6 }
 0x53a   : > { %p2319_p8 = pneg %p2318_p7 }
 0x53c   : > { %2473 = dma.done.wait (%p2319_p8), %s2112_s17, 4096  }
 0x53d   : > { %2475 = vsyncadd (%p2319_p8), %s2112_s17, 4294963200  ;;  %p16_p9 = scmp.ge.s32.totalorder %s2559_s27, 4   ;;  %s3576_s21 = smov %s2482_s22 }
 0x53e   : > { %s3577_s22 = smov %s2486_s23  ;;  %s3578_s23 = smov %s2570_s30 }
 0x53f   : > { %s3579_s24 = smov %s2559_s27  ;;  %18 = sbr.rel (!%p16_p9) target bundleno = 3 (0x3), region = 82 }
 0x544   :  { %2118 = vsyncpa [#allocation3], 1 }
 0x545   :  { %2120 = vsyncpa [#allocation3 + $0x1], 1 }

</bundles_post_ra>
